<compile_context>
chip_gen: v5e
topology: v5e:2x2
jax: 0.10.0
libtpu: 0.0.40
codegen_flags: <defaults>
</compile_context>

<pallas_src>
import math

import jax
import jax.numpy as jnp
from jax.experimental import pallas as pl
from jax.experimental.pallas import tpu as pltpu  # noqa: F401  (kept for TPU backend)

# ----------------------------- config -------------------------------------
VOCAB = 128
D = 32          # embedding_dim
N_HEADS = 4
HEAD_DIM = D // N_HEADS
FFN = 4 * D     # 128
N_LAYERS = 2
MAX_SEQ = 16
LN_EPS = 1e-5

# rows of the packed per-layer vector tensor (L, 8, FFN)
ROW_BQKV, ROW_BO, ROW_G1, ROW_BE1, ROW_B1, ROW_B2, ROW_G2, ROW_BE2 = range(8)


# --------------------------- kernel helpers --------------------------------
def _layer_norm(x, gamma, beta, eps=LN_EPS):
    mu = jnp.mean(x, axis=-1, keepdims=True)
    var = jnp.mean(jnp.square(x - mu), axis=-1, keepdims=True)
    return (x - mu) * jax.lax.rsqrt(var + eps) * gamma + beta


def _bf16(x):
    return x.astype(jnp.bfloat16)


# ------------------------------ fused kernel -------------------------------
def bert_kernel(x_ref, mask_ref, lnm_ref, wqkv_ref, wo_ref, w1_ref, w2_ref,
                vec_ref, embt_ref, out_ref):
    """Full BERT forward for the whole flattened batch: (BS, D) -> (BS, VOCAB)."""
    x = x_ref[...]                          # (BS, D)  f32
    add_mask = mask_ref[...]                # (BS, BS) f32 additive mask
    lnm = lnm_ref[...]                      # (4, D): emb_g, emb_b, cls_g, cls_b

    # ---- Embedder LayerNorm (token + pos already summed in the wrapper) ----
    h = _layer_norm(x, lnm[0:1, :], lnm[1:2, :])

    scale = 1.0 / math.sqrt(HEAD_DIM)
    for li in range(N_LAYERS):              # static loop; weights VMEM-resident
        wqkv = wqkv_ref[li]                 # (D, 3D)  bf16
        wo = wo_ref[li]                     # (D, D)   bf16
        w1 = w1_ref[li]                     # (D, FFN) bf16
        w2 = w2_ref[li]                     # (FFN, D) bf16
        vec = vec_ref[li]                   # (8, FFN) f32 packed biases/LN params
        b_qkv = vec[ROW_BQKV:ROW_BQKV + 1, :3 * D]
        b_o = vec[ROW_BO:ROW_BO + 1, :D]
        g1 = vec[ROW_G1:ROW_G1 + 1, :D]
        be1 = vec[ROW_BE1:ROW_BE1 + 1, :D]
        b1 = vec[ROW_B1:ROW_B1 + 1, :FFN]
        b2 = vec[ROW_B2:ROW_B2 + 1, :D]
        g2 = vec[ROW_G2:ROW_G2 + 1, :D]
        be2 = vec[ROW_BE2:ROW_BE2 + 1, :D]

        # ---- fused QKV projection: one bf16 MXU push with N = 3D ----
        qkv = jnp.dot(_bf16(h), wqkv,
                      preferred_element_type=jnp.float32) + b_qkv
        q = _bf16(qkv[:, :D])
        k = _bf16(qkv[:, D:2 * D])
        v = _bf16(qkv[:, 2 * D:])

        # ---- multi-head attention over the whole flattened batch ----
        # add_mask is block-diagonal in batch + key-padding, so one (BS, BS)
        # score matrix per head is valid; head outputs stay in registers.
        heads = []
        for hh in range(N_HEADS):           # static unrolled head loop
            lo = hh * HEAD_DIM
            qh = q[:, lo:lo + HEAD_DIM]     # (BS, HD) bf16 register slices
            kh = k[:, lo:lo + HEAD_DIM]
            vh = v[:, lo:lo + HEAD_DIM]
            s = jax.lax.dot_general(qh, kh, (((1,), (1,)), ((), ())),
                                    preferred_element_type=jnp.float32)
            s = s * scale + add_mask                       # (BS, BS)
            s = s - jnp.max(s, axis=-1, keepdims=True)
            p = jnp.exp(s)
            p = p * pl.reciprocal(jnp.sum(p, axis=-1, keepdims=True),
                                  approx=True)
            heads.append(jnp.dot(_bf16(p), vh,
                                 preferred_element_type=jnp.float32))
        attn = jnp.concatenate(heads, axis=-1)             # (BS, D) f32
        attn = jnp.dot(_bf16(attn), wo,
                       preferred_element_type=jnp.float32) + b_o

        # ---- post-LN residual + GELU FFN ----
        h1 = _layer_norm(h + attn, g1, be1)
        ff = jnp.dot(_bf16(h1), w1, preferred_element_type=jnp.float32) + b1
        ff = jax.nn.gelu(ff, approximate=True)
        ff = jnp.dot(_bf16(ff), w2, preferred_element_type=jnp.float32) + b2
        h = _layer_norm(h1 + ff, g2, be2)

    # ---- classifier: LayerNorm + tied-embedding projection (lane-dense) ----
    hn = _layer_norm(h, lnm[2:3, :], lnm[3:4, :])
    out_ref[...] = jnp.dot(_bf16(hn), embt_ref[...],
                           preferred_element_type=jnp.float32)


# ------------------------------ forward ------------------------------------
@jax.jit
def bert_forward(params, token_ids, attention_mask):
    B, S = token_ids.shape
    BS = B * S

    # Embedding gather + positional add: no clean Pallas equivalent at this
    # size -> XLA glue.  Everything downstream is a single fused Pallas call.
    # TODO(synk): could be folded in via PrefetchScalarGridSpec + pl.Element
    #             row gather; low priority at B*S=16.
    tok = jnp.take(params["emb"], token_ids, axis=0)          # (B, S, D)
    pos = params["pos"][:S][None, :, :]                       # (1, S, D)
    x = (tok + pos).astype(jnp.float32).reshape(BS, D)

    # Additive (BS, BS) mask: 0 where row i may attend to key j (same batch
    # element and key not padded), -1e9 otherwise -> block-diagonal attention
    # over the flattened batch inside the kernel.
    batch_ids = jnp.repeat(jnp.arange(B), S)                  # (BS,)
    same_batch = batch_ids[:, None] == batch_ids[None, :]     # (BS, BS)
    key_valid = (attention_mask.reshape(BS) > 0)[None, :]     # (1, BS)
    add_mask = jnp.where(jnp.logical_and(same_batch, key_valid),
                         0.0, -1e9).astype(jnp.float32)

    # Tied classifier weight, pre-transposed to (D, VOCAB) and cast to bf16
    # so the final dot is a plain (BS, D) @ (D, VOCAB) lane-dense matmul.
    emb_t = params["emb"].T.astype(jnp.bfloat16)              # (D, VOCAB)

    # Single kernel invocation (no grid): every operand is tiny and lives
    # fully in VMEM; the only HBM writeback is the lane-dense logits slab.
    logits = pl.pallas_call(
        bert_kernel,
        out_shape=jax.ShapeDtypeStruct((BS, VOCAB), jnp.float32),
    )(x, add_mask, params["ln_misc"], params["wqkv"], params["wo"],
      params["w1"], params["w2"], params["vec"], emb_t)
    return logits.reshape(B, S, VOCAB)


# ----------------------------- parameters ----------------------------------
def init_params(key):
    """Packed parameters mirroring BERT.init_weights (normal(0, 0.02))."""
    def normal(k, shape):
        return 0.02 * jax.random.normal(k, shape, dtype=jnp.float32)

    def pad_row(v):                       # pad a 1-D vector to FFN lanes
        return jnp.pad(v, (0, FFN - v.shape[0]))

    keys = jax.random.split(key, 2 + N_LAYERS)

    # Packed per-layer vectors: biases are zeros, LN gammas ones, betas zeros.
    layer_vec = jnp.stack([
        pad_row(jnp.zeros((3 * D,), jnp.float32)),   # b_qkv
        pad_row(jnp.zeros((D,), jnp.float32)),       # b_o
        pad_row(jnp.ones((D,), jnp.float32)),        # ln1 gamma
        pad_row(jnp.zeros((D,), jnp.float32)),       # ln1 beta
        jnp.zeros((FFN,), jnp.float32),              # b_ffn1
        pad_row(jnp.zeros((D,), jnp.float32)),       # b_ffn2
        pad_row(jnp.ones((D,), jnp.float32)),        # ln2 gamma
        pad_row(jnp.zeros((D,), jnp.float32)),       # ln2 beta
    ])

    wqkv, wo, w1, w2, vec = [], [], [], [], []
    for li in range(N_LAYERS):
        lk = jax.random.split(keys[2 + li], 6)
        wq, wk, wv = (normal(lk[i], (D, D)) for i in range(3))
        # Linear weights stored as (in, out): kernel computes x @ W + b.
        # Matmul weights are stored bf16 (MXU-native; halves weight DMA).
        wqkv.append(jnp.concatenate([wq, wk, wv], axis=1).astype(jnp.bfloat16))
        wo.append(normal(lk[3], (D, D)).astype(jnp.bfloat16))
        w1.append(normal(lk[4], (D, FFN)).astype(jnp.bfloat16))
        w2.append(normal(lk[5], (FFN, D)).astype(jnp.bfloat16))
        vec.append(layer_vec)

    return {
        "emb": normal(keys[0], (VOCAB, D)),       # token embedding (tied), f32
        "pos": normal(keys[1], (MAX_SEQ, D)),     # learned position embedding
        "ln_misc": jnp.stack([jnp.ones((D,), jnp.float32),     # embedder LN g
                              jnp.zeros((D,), jnp.float32),    # embedder LN b
                              jnp.ones((D,), jnp.float32),     # classifier LN g
                              jnp.zeros((D,), jnp.float32)]),  # classifier LN b
        "wqkv": jnp.stack(wqkv),                  # (L, D, 3D)  bf16
        "wo": jnp.stack(wo),                      # (L, D, D)   bf16
        "w1": jnp.stack(w1),                      # (L, D, FFN) bf16
        "w2": jnp.stack(w2),                      # (L, FFN, D) bf16
        "vec": jnp.stack(vec),                    # (L, 8, FFN) f32
    }


# -------------------------------- main --------------------------------------
if __name__ == "__main__":
    key = jax.random.PRNGKey(0)
    pkey, ikey = jax.random.split(key)

    params = init_params(pkey)

    B, S = 2, 8
    token_ids = jax.random.randint(ikey, (B, S), 0, VOCAB, dtype=jnp.int32)
    attention_mask = jnp.array(
        [[1, 1, 1, 1, 1, 1, 1, 1],
         [1, 1, 1, 1, 1, 1, 0, 0]], dtype=jnp.int32)          # (B, S)

    logits = bert_forward(params, token_ids, attention_mask)
    logits = jax.block_until_ready(logits)

    assert logits.shape == (B, S, VOCAB)
    assert jnp.all(jnp.isfinite(logits))
    print("KERNEL_OK")
</pallas_src>

<mosaic_0001>
module attributes {stable_mosaic.version = 11 : i64} {
  func.func @bert_kernel(%arg0: memref<16x32xf32, #tpu.memory_space<vmem>>, %arg1: memref<16x16xf32, #tpu.memory_space<vmem>>, %arg2: memref<4x32xf32, #tpu.memory_space<vmem>>, %arg3: memref<2x32x96xbf16, #tpu.memory_space<vmem>>, %arg4: memref<2x32x32xbf16, #tpu.memory_space<vmem>>, %arg5: memref<2x32x128xbf16, #tpu.memory_space<vmem>>, %arg6: memref<2x128x32xbf16, #tpu.memory_space<vmem>>, %arg7: memref<2x8x128xf32, #tpu.memory_space<vmem>>, %arg8: memref<32x128xbf16, #tpu.memory_space<vmem>>, %arg9: memref<16x128xf32, #tpu.memory_space<vmem>>) attributes {dimension_semantics = [], scalar_prefetch = 0 : i64, scratch_operands = 0 : i64, tpu.core_type = #tpu.core_type<tc>} {
    %c0 = arith.constant 0 : index
    %c0_0 = arith.constant 0 : index
    %0 = vector.load %arg0[%c0, %c0_0] : memref<16x32xf32, #tpu.memory_space<vmem>>, vector<16x32xf32>
    %c0_1 = arith.constant 0 : index
    %c0_2 = arith.constant 0 : index
    %1 = vector.load %arg1[%c0_1, %c0_2] : memref<16x16xf32, #tpu.memory_space<vmem>>, vector<16x16xf32>
    %c0_3 = arith.constant 0 : index
    %c0_4 = arith.constant 0 : index
    %2 = vector.load %arg2[%c0_3, %c0_4] : memref<4x32xf32, #tpu.memory_space<vmem>>, vector<4x32xf32>
    %3 = vector.extract_strided_slice %2 {offsets = [0, 0], sizes = [1, 32], strides = [1, 1]} : vector<4x32xf32> to vector<1x32xf32>
    %4 = vector.extract_strided_slice %2 {offsets = [1, 0], sizes = [1, 32], strides = [1, 1]} : vector<4x32xf32> to vector<1x32xf32>
    %cst = arith.constant dense<0.000000e+00> : vector<16xf32>
    %5 = vector.multi_reduction <add>, %0, %cst [1] : vector<16x32xf32> to vector<16xf32>
    %6 = vector.shape_cast %5 : vector<16xf32> to vector<16x1xf32>
    %cst_5 = arith.constant 3.200000e+01 : f32
    %7 = vector.broadcast %cst_5 : f32 to vector<16x1xf32>
    %8 = arith.divf %6, %7 : vector<16x1xf32>
    %9 = vector.broadcast %8 : vector<16x1xf32> to vector<16x32xf32>
    %10 = arith.subf %0, %9 : vector<16x32xf32>
    %11 = arith.mulf %10, %10 : vector<16x32xf32>
    %cst_6 = arith.constant dense<0.000000e+00> : vector<16xf32>
    %12 = vector.multi_reduction <add>, %11, %cst_6 [1] : vector<16x32xf32> to vector<16xf32>
    %13 = vector.shape_cast %12 : vector<16xf32> to vector<16x1xf32>
    %cst_7 = arith.constant 3.200000e+01 : f32
    %14 = vector.broadcast %cst_7 : f32 to vector<16x1xf32>
    %15 = arith.divf %13, %14 : vector<16x1xf32>
    %16 = vector.broadcast %8 : vector<16x1xf32> to vector<16x32xf32>
    %17 = arith.subf %0, %16 : vector<16x32xf32>
    %cst_8 = arith.constant 9.99999974E-6 : f32
    %18 = vector.broadcast %cst_8 : f32 to vector<16x1xf32>
    %19 = arith.addf %15, %18 : vector<16x1xf32>
    %20 = math.rsqrt %19 : vector<16x1xf32>
    %21 = vector.broadcast %20 : vector<16x1xf32> to vector<16x32xf32>
    %22 = arith.mulf %17, %21 : vector<16x32xf32>
    %23 = vector.broadcast %3 : vector<1x32xf32> to vector<16x32xf32>
    %24 = arith.mulf %22, %23 : vector<16x32xf32>
    %25 = vector.broadcast %4 : vector<1x32xf32> to vector<16x32xf32>
    %26 = arith.addf %24, %25 : vector<16x32xf32>
    %c0_9 = arith.constant 0 : index
    %c0_10 = arith.constant 0 : index
    %c0_11 = arith.constant 0 : index
    %27 = vector.load %arg3[%c0_9, %c0_10, %c0_11] : memref<2x32x96xbf16, #tpu.memory_space<vmem>>, vector<1x32x96xbf16>
    %28 = vector.shape_cast %27 : vector<1x32x96xbf16> to vector<32x96xbf16>
    %c0_12 = arith.constant 0 : index
    %c0_13 = arith.constant 0 : index
    %c0_14 = arith.constant 0 : index
    %29 = vector.load %arg4[%c0_12, %c0_13, %c0_14] : memref<2x32x32xbf16, #tpu.memory_space<vmem>>, vector<1x32x32xbf16>
    %30 = vector.shape_cast %29 : vector<1x32x32xbf16> to vector<32x32xbf16>
    %c0_15 = arith.constant 0 : index
    %c0_16 = arith.constant 0 : index
    %c0_17 = arith.constant 0 : index
    %31 = vector.load %arg5[%c0_15, %c0_16, %c0_17] : memref<2x32x128xbf16, #tpu.memory_space<vmem>>, vector<1x32x128xbf16>
    %32 = vector.shape_cast %31 : vector<1x32x128xbf16> to vector<32x128xbf16>
    %c0_18 = arith.constant 0 : index
    %c0_19 = arith.constant 0 : index
    %c0_20 = arith.constant 0 : index
    %33 = vector.load %arg6[%c0_18, %c0_19, %c0_20] : memref<2x128x32xbf16, #tpu.memory_space<vmem>>, vector<1x128x32xbf16>
    %34 = vector.shape_cast %33 : vector<1x128x32xbf16> to vector<128x32xbf16>
    %c0_21 = arith.constant 0 : index
    %c0_22 = arith.constant 0 : index
    %c0_23 = arith.constant 0 : index
    %35 = vector.load %arg7[%c0_21, %c0_22, %c0_23] : memref<2x8x128xf32, #tpu.memory_space<vmem>>, vector<1x8x128xf32>
    %36 = vector.shape_cast %35 : vector<1x8x128xf32> to vector<8x128xf32>
    %37 = vector.extract_strided_slice %36 {offsets = [0, 0], sizes = [1, 96], strides = [1, 1]} : vector<8x128xf32> to vector<1x96xf32>
    %38 = vector.extract_strided_slice %36 {offsets = [1, 0], sizes = [1, 32], strides = [1, 1]} : vector<8x128xf32> to vector<1x32xf32>
    %39 = vector.extract_strided_slice %36 {offsets = [2, 0], sizes = [1, 32], strides = [1, 1]} : vector<8x128xf32> to vector<1x32xf32>
    %40 = vector.extract_strided_slice %36 {offsets = [3, 0], sizes = [1, 32], strides = [1, 1]} : vector<8x128xf32> to vector<1x32xf32>
    %41 = vector.extract_strided_slice %36 {offsets = [4, 0], sizes = [1, 128], strides = [1, 1]} : vector<8x128xf32> to vector<1x128xf32>
    %42 = vector.extract_strided_slice %36 {offsets = [5, 0], sizes = [1, 32], strides = [1, 1]} : vector<8x128xf32> to vector<1x32xf32>
    %43 = vector.extract_strided_slice %36 {offsets = [6, 0], sizes = [1, 32], strides = [1, 1]} : vector<8x128xf32> to vector<1x32xf32>
    %44 = vector.extract_strided_slice %36 {offsets = [7, 0], sizes = [1, 32], strides = [1, 1]} : vector<8x128xf32> to vector<1x32xf32>
    %45 = arith.truncf %26 : vector<16x32xf32> to vector<16x32xbf16>
    %cst_24 = arith.constant dense<0.000000e+00> : vector<16x96xf32>
    %46 = tpu.matmul %45, %28, %cst_24 {dimension_numbers = #tpu.dot_dimension_numbers<[1], [0], [0], [1], [0, 0, 1, 1], [], []>} : vector<16x32xbf16>, vector<32x96xbf16>, vector<16x96xf32> -> vector<16x96xf32>
    %47 = vector.broadcast %37 : vector<1x96xf32> to vector<16x96xf32>
    %48 = arith.addf %46, %47 : vector<16x96xf32>
    %49 = vector.extract_strided_slice %48 {offsets = [0, 0], sizes = [16, 32], strides = [1, 1]} : vector<16x96xf32> to vector<16x32xf32>
    %50 = arith.truncf %49 : vector<16x32xf32> to vector<16x32xbf16>
    %51 = vector.extract_strided_slice %48 {offsets = [0, 32], sizes = [16, 32], strides = [1, 1]} : vector<16x96xf32> to vector<16x32xf32>
    %52 = arith.truncf %51 : vector<16x32xf32> to vector<16x32xbf16>
    %53 = vector.extract_strided_slice %48 {offsets = [0, 64], sizes = [16, 32], strides = [1, 1]} : vector<16x96xf32> to vector<16x32xf32>
    %54 = arith.truncf %53 : vector<16x32xf32> to vector<16x32xbf16>
    %55 = vector.extract_strided_slice %50 {offsets = [0, 0], sizes = [16, 8], strides = [1, 1]} : vector<16x32xbf16> to vector<16x8xbf16>
    %56 = vector.extract_strided_slice %52 {offsets = [0, 0], sizes = [16, 8], strides = [1, 1]} : vector<16x32xbf16> to vector<16x8xbf16>
    %57 = vector.extract_strided_slice %54 {offsets = [0, 0], sizes = [16, 8], strides = [1, 1]} : vector<16x32xbf16> to vector<16x8xbf16>
    %cst_25 = arith.constant dense<0.000000e+00> : vector<16x16xf32>
    %58 = tpu.matmul %55, %56, %cst_25 {dimension_numbers = #tpu.dot_dimension_numbers<[1], [1], [0], [0], [0, 0, 1, 0], [], []>} : vector<16x8xbf16>, vector<16x8xbf16>, vector<16x16xf32> -> vector<16x16xf32>
    %cst_26 = arith.constant 0.353553385 : f32
    %59 = vector.broadcast %cst_26 : f32 to vector<16x16xf32>
    %60 = arith.mulf %58, %59 : vector<16x16xf32>
    %61 = arith.addf %60, %1 : vector<16x16xf32>
    %cst_27 = arith.constant dense<0xFF800000> : vector<16xf32>
    %62 = vector.multi_reduction <maximumf>, %61, %cst_27 [1] : vector<16x16xf32> to vector<16xf32>
    %63 = vector.shape_cast %62 : vector<16xf32> to vector<16x1xf32>
    %64 = vector.broadcast %63 : vector<16x1xf32> to vector<16x16xf32>
    %65 = arith.subf %61, %64 : vector<16x16xf32>
    %66 = math.exp %65 : vector<16x16xf32>
    %cst_28 = arith.constant dense<0.000000e+00> : vector<16xf32>
    %67 = vector.multi_reduction <add>, %66, %cst_28 [1] : vector<16x16xf32> to vector<16xf32>
    %68 = vector.shape_cast %67 : vector<16xf32> to vector<16x1xf32>
    %69 = tpu.reciprocal %68 {approx = true} : vector<16x1xf32> -> vector<16x1xf32>
    %70 = vector.broadcast %69 : vector<16x1xf32> to vector<16x16xf32>
    %71 = arith.mulf %66, %70 : vector<16x16xf32>
    %72 = arith.truncf %71 : vector<16x16xf32> to vector<16x16xbf16>
    %cst_29 = arith.constant dense<0.000000e+00> : vector<16x8xf32>
    %73 = tpu.matmul %72, %57, %cst_29 {dimension_numbers = #tpu.dot_dimension_numbers<[1], [0], [0], [1], [0, 0, 1, 1], [], []>} : vector<16x16xbf16>, vector<16x8xbf16>, vector<16x8xf32> -> vector<16x8xf32>
    %74 = vector.extract_strided_slice %50 {offsets = [0, 8], sizes = [16, 8], strides = [1, 1]} : vector<16x32xbf16> to vector<16x8xbf16>
    %75 = vector.extract_strided_slice %52 {offsets = [0, 8], sizes = [16, 8], strides = [1, 1]} : vector<16x32xbf16> to vector<16x8xbf16>
    %76 = vector.extract_strided_slice %54 {offsets = [0, 8], sizes = [16, 8], strides = [1, 1]} : vector<16x32xbf16> to vector<16x8xbf16>
    %cst_30 = arith.constant dense<0.000000e+00> : vector<16x16xf32>
    %77 = tpu.matmul %74, %75, %cst_30 {dimension_numbers = #tpu.dot_dimension_numbers<[1], [1], [0], [0], [0, 0, 1, 0], [], []>} : vector<16x8xbf16>, vector<16x8xbf16>, vector<16x16xf32> -> vector<16x16xf32>
    %cst_31 = arith.constant 0.353553385 : f32
    %78 = vector.broadcast %cst_31 : f32 to vector<16x16xf32>
    %79 = arith.mulf %77, %78 : vector<16x16xf32>
    %80 = arith.addf %79, %1 : vector<16x16xf32>
    %cst_32 = arith.constant dense<0xFF800000> : vector<16xf32>
    %81 = vector.multi_reduction <maximumf>, %80, %cst_32 [1] : vector<16x16xf32> to vector<16xf32>
    %82 = vector.shape_cast %81 : vector<16xf32> to vector<16x1xf32>
    %83 = vector.broadcast %82 : vector<16x1xf32> to vector<16x16xf32>
    %84 = arith.subf %80, %83 : vector<16x16xf32>
    %85 = math.exp %84 : vector<16x16xf32>
    %cst_33 = arith.constant dense<0.000000e+00> : vector<16xf32>
    %86 = vector.multi_reduction <add>, %85, %cst_33 [1] : vector<16x16xf32> to vector<16xf32>
    %87 = vector.shape_cast %86 : vector<16xf32> to vector<16x1xf32>
    %88 = tpu.reciprocal %87 {approx = true} : vector<16x1xf32> -> vector<16x1xf32>
    %89 = vector.broadcast %88 : vector<16x1xf32> to vector<16x16xf32>
    %90 = arith.mulf %85, %89 : vector<16x16xf32>
    %91 = arith.truncf %90 : vector<16x16xf32> to vector<16x16xbf16>
    %cst_34 = arith.constant dense<0.000000e+00> : vector<16x8xf32>
    %92 = tpu.matmul %91, %76, %cst_34 {dimension_numbers = #tpu.dot_dimension_numbers<[1], [0], [0], [1], [0, 0, 1, 1], [], []>} : vector<16x16xbf16>, vector<16x8xbf16>, vector<16x8xf32> -> vector<16x8xf32>
    %93 = vector.extract_strided_slice %50 {offsets = [0, 16], sizes = [16, 8], strides = [1, 1]} : vector<16x32xbf16> to vector<16x8xbf16>
    %94 = vector.extract_strided_slice %52 {offsets = [0, 16], sizes = [16, 8], strides = [1, 1]} : vector<16x32xbf16> to vector<16x8xbf16>
    %95 = vector.extract_strided_slice %54 {offsets = [0, 16], sizes = [16, 8], strides = [1, 1]} : vector<16x32xbf16> to vector<16x8xbf16>
    %cst_35 = arith.constant dense<0.000000e+00> : vector<16x16xf32>
    %96 = tpu.matmul %93, %94, %cst_35 {dimension_numbers = #tpu.dot_dimension_numbers<[1], [1], [0], [0], [0, 0, 1, 0], [], []>} : vector<16x8xbf16>, vector<16x8xbf16>, vector<16x16xf32> -> vector<16x16xf32>
    %cst_36 = arith.constant 0.353553385 : f32
    %97 = vector.broadcast %cst_36 : f32 to vector<16x16xf32>
    %98 = arith.mulf %96, %97 : vector<16x16xf32>
    %99 = arith.addf %98, %1 : vector<16x16xf32>
    %cst_37 = arith.constant dense<0xFF800000> : vector<16xf32>
    %100 = vector.multi_reduction <maximumf>, %99, %cst_37 [1] : vector<16x16xf32> to vector<16xf32>
    %101 = vector.shape_cast %100 : vector<16xf32> to vector<16x1xf32>
    %102 = vector.broadcast %101 : vector<16x1xf32> to vector<16x16xf32>
    %103 = arith.subf %99, %102 : vector<16x16xf32>
    %104 = math.exp %103 : vector<16x16xf32>
    %cst_38 = arith.constant dense<0.000000e+00> : vector<16xf32>
    %105 = vector.multi_reduction <add>, %104, %cst_38 [1] : vector<16x16xf32> to vector<16xf32>
    %106 = vector.shape_cast %105 : vector<16xf32> to vector<16x1xf32>
    %107 = tpu.reciprocal %106 {approx = true} : vector<16x1xf32> -> vector<16x1xf32>
    %108 = vector.broadcast %107 : vector<16x1xf32> to vector<16x16xf32>
    %109 = arith.mulf %104, %108 : vector<16x16xf32>
    %110 = arith.truncf %109 : vector<16x16xf32> to vector<16x16xbf16>
    %cst_39 = arith.constant dense<0.000000e+00> : vector<16x8xf32>
    %111 = tpu.matmul %110, %95, %cst_39 {dimension_numbers = #tpu.dot_dimension_numbers<[1], [0], [0], [1], [0, 0, 1, 1], [], []>} : vector<16x16xbf16>, vector<16x8xbf16>, vector<16x8xf32> -> vector<16x8xf32>
    %112 = vector.extract_strided_slice %50 {offsets = [0, 24], sizes = [16, 8], strides = [1, 1]} : vector<16x32xbf16> to vector<16x8xbf16>
    %113 = vector.extract_strided_slice %52 {offsets = [0, 24], sizes = [16, 8], strides = [1, 1]} : vector<16x32xbf16> to vector<16x8xbf16>
    %114 = vector.extract_strided_slice %54 {offsets = [0, 24], sizes = [16, 8], strides = [1, 1]} : vector<16x32xbf16> to vector<16x8xbf16>
    %cst_40 = arith.constant dense<0.000000e+00> : vector<16x16xf32>
    %115 = tpu.matmul %112, %113, %cst_40 {dimension_numbers = #tpu.dot_dimension_numbers<[1], [1], [0], [0], [0, 0, 1, 0], [], []>} : vector<16x8xbf16>, vector<16x8xbf16>, vector<16x16xf32> -> vector<16x16xf32>
    %cst_41 = arith.constant 0.353553385 : f32
    %116 = vector.broadcast %cst_41 : f32 to vector<16x16xf32>
    %117 = arith.mulf %115, %116 : vector<16x16xf32>
    %118 = arith.addf %117, %1 : vector<16x16xf32>
    %cst_42 = arith.constant dense<0xFF800000> : vector<16xf32>
    %119 = vector.multi_reduction <maximumf>, %118, %cst_42 [1] : vector<16x16xf32> to vector<16xf32>
    %120 = vector.shape_cast %119 : vector<16xf32> to vector<16x1xf32>
    %121 = vector.broadcast %120 : vector<16x1xf32> to vector<16x16xf32>
    %122 = arith.subf %118, %121 : vector<16x16xf32>
    %123 = math.exp %122 : vector<16x16xf32>
    %cst_43 = arith.constant dense<0.000000e+00> : vector<16xf32>
    %124 = vector.multi_reduction <add>, %123, %cst_43 [1] : vector<16x16xf32> to vector<16xf32>
    %125 = vector.shape_cast %124 : vector<16xf32> to vector<16x1xf32>
    %126 = tpu.reciprocal %125 {approx = true} : vector<16x1xf32> -> vector<16x1xf32>
    %127 = vector.broadcast %126 : vector<16x1xf32> to vector<16x16xf32>
    %128 = arith.mulf %123, %127 : vector<16x16xf32>
    %129 = arith.truncf %128 : vector<16x16xf32> to vector<16x16xbf16>
    %cst_44 = arith.constant dense<0.000000e+00> : vector<16x8xf32>
    %130 = tpu.matmul %129, %114, %cst_44 {dimension_numbers = #tpu.dot_dimension_numbers<[1], [0], [0], [1], [0, 0, 1, 1], [], []>} : vector<16x16xbf16>, vector<16x8xbf16>, vector<16x8xf32> -> vector<16x8xf32>
    %131 = tpu.concatenate %73, %92, %111, %130 in 1 : vector<16x8xf32>, vector<16x8xf32>, vector<16x8xf32>, vector<16x8xf32> -> vector<16x32xf32>
    %132 = arith.truncf %131 : vector<16x32xf32> to vector<16x32xbf16>
    %cst_45 = arith.constant dense<0.000000e+00> : vector<16x32xf32>
    %133 = tpu.matmul %132, %30, %cst_45 {dimension_numbers = #tpu.dot_dimension_numbers<[1], [0], [0], [1], [0, 0, 1, 1], [], []>} : vector<16x32xbf16>, vector<32x32xbf16>, vector<16x32xf32> -> vector<16x32xf32>
    %134 = vector.broadcast %38 : vector<1x32xf32> to vector<16x32xf32>
    %135 = arith.addf %133, %134 : vector<16x32xf32>
    %136 = arith.addf %26, %135 : vector<16x32xf32>
    %cst_46 = arith.constant dense<0.000000e+00> : vector<16xf32>
    %137 = vector.multi_reduction <add>, %136, %cst_46 [1] : vector<16x32xf32> to vector<16xf32>
    %138 = vector.shape_cast %137 : vector<16xf32> to vector<16x1xf32>
    %cst_47 = arith.constant 3.200000e+01 : f32
    %139 = vector.broadcast %cst_47 : f32 to vector<16x1xf32>
    %140 = arith.divf %138, %139 : vector<16x1xf32>
    %141 = vector.broadcast %140 : vector<16x1xf32> to vector<16x32xf32>
    %142 = arith.subf %136, %141 : vector<16x32xf32>
    %143 = arith.mulf %142, %142 : vector<16x32xf32>
    %cst_48 = arith.constant dense<0.000000e+00> : vector<16xf32>
    %144 = vector.multi_reduction <add>, %143, %cst_48 [1] : vector<16x32xf32> to vector<16xf32>
    %145 = vector.shape_cast %144 : vector<16xf32> to vector<16x1xf32>
    %cst_49 = arith.constant 3.200000e+01 : f32
    %146 = vector.broadcast %cst_49 : f32 to vector<16x1xf32>
    %147 = arith.divf %145, %146 : vector<16x1xf32>
    %148 = vector.broadcast %140 : vector<16x1xf32> to vector<16x32xf32>
    %149 = arith.subf %136, %148 : vector<16x32xf32>
    %cst_50 = arith.constant 9.99999974E-6 : f32
    %150 = vector.broadcast %cst_50 : f32 to vector<16x1xf32>
    %151 = arith.addf %147, %150 : vector<16x1xf32>
    %152 = math.rsqrt %151 : vector<16x1xf32>
    %153 = vector.broadcast %152 : vector<16x1xf32> to vector<16x32xf32>
    %154 = arith.mulf %149, %153 : vector<16x32xf32>
    %155 = vector.broadcast %39 : vector<1x32xf32> to vector<16x32xf32>
    %156 = arith.mulf %154, %155 : vector<16x32xf32>
    %157 = vector.broadcast %40 : vector<1x32xf32> to vector<16x32xf32>
    %158 = arith.addf %156, %157 : vector<16x32xf32>
    %159 = arith.truncf %158 : vector<16x32xf32> to vector<16x32xbf16>
    %cst_51 = arith.constant dense<0.000000e+00> : vector<16x128xf32>
    %160 = tpu.matmul %159, %32, %cst_51 {dimension_numbers = #tpu.dot_dimension_numbers<[1], [0], [0], [1], [0, 0, 1, 1], [], []>} : vector<16x32xbf16>, vector<32x128xbf16>, vector<16x128xf32> -> vector<16x128xf32>
    %161 = vector.broadcast %41 : vector<1x128xf32> to vector<16x128xf32>
    %162 = arith.addf %160, %161 : vector<16x128xf32>
    %163 = arith.mulf %162, %162 : vector<16x128xf32>
    %164 = arith.mulf %162, %163 : vector<16x128xf32>
    %cst_52 = arith.constant 4.471500e-02 : f32
    %165 = vector.broadcast %cst_52 : f32 to vector<16x128xf32>
    %166 = arith.mulf %165, %164 : vector<16x128xf32>
    %167 = arith.addf %162, %166 : vector<16x128xf32>
    %cst_53 = arith.constant 0.797884583 : f32
    %168 = vector.broadcast %cst_53 : f32 to vector<16x128xf32>
    %169 = arith.mulf %168, %167 : vector<16x128xf32>
    %170 = math.tanh %169 : vector<16x128xf32>
    %cst_54 = arith.constant 1.000000e+00 : f32
    %171 = vector.broadcast %cst_54 : f32 to vector<16x128xf32>
    %172 = arith.addf %171, %170 : vector<16x128xf32>
    %cst_55 = arith.constant 5.000000e-01 : f32
    %173 = vector.broadcast %cst_55 : f32 to vector<16x128xf32>
    %174 = arith.mulf %173, %172 : vector<16x128xf32>
    %175 = arith.mulf %162, %174 : vector<16x128xf32>
    %176 = arith.truncf %175 : vector<16x128xf32> to vector<16x128xbf16>
    %cst_56 = arith.constant dense<0.000000e+00> : vector<16x32xf32>
    %177 = tpu.matmul %176, %34, %cst_56 {dimension_numbers = #tpu.dot_dimension_numbers<[1], [0], [0], [1], [0, 0, 1, 1], [], []>} : vector<16x128xbf16>, vector<128x32xbf16>, vector<16x32xf32> -> vector<16x32xf32>
    %178 = vector.broadcast %42 : vector<1x32xf32> to vector<16x32xf32>
    %179 = arith.addf %177, %178 : vector<16x32xf32>
    %180 = arith.addf %158, %179 : vector<16x32xf32>
    %cst_57 = arith.constant dense<0.000000e+00> : vector<16xf32>
    %181 = vector.multi_reduction <add>, %180, %cst_57 [1] : vector<16x32xf32> to vector<16xf32>
    %182 = vector.shape_cast %181 : vector<16xf32> to vector<16x1xf32>
    %cst_58 = arith.constant 3.200000e+01 : f32
    %183 = vector.broadcast %cst_58 : f32 to vector<16x1xf32>
    %184 = arith.divf %182, %183 : vector<16x1xf32>
    %185 = vector.broadcast %184 : vector<16x1xf32> to vector<16x32xf32>
    %186 = arith.subf %180, %185 : vector<16x32xf32>
    %187 = arith.mulf %186, %186 : vector<16x32xf32>
    %cst_59 = arith.constant dense<0.000000e+00> : vector<16xf32>
    %188 = vector.multi_reduction <add>, %187, %cst_59 [1] : vector<16x32xf32> to vector<16xf32>
    %189 = vector.shape_cast %188 : vector<16xf32> to vector<16x1xf32>
    %cst_60 = arith.constant 3.200000e+01 : f32
    %190 = vector.broadcast %cst_60 : f32 to vector<16x1xf32>
    %191 = arith.divf %189, %190 : vector<16x1xf32>
    %192 = vector.broadcast %184 : vector<16x1xf32> to vector<16x32xf32>
    %193 = arith.subf %180, %192 : vector<16x32xf32>
    %cst_61 = arith.constant 9.99999974E-6 : f32
    %194 = vector.broadcast %cst_61 : f32 to vector<16x1xf32>
    %195 = arith.addf %191, %194 : vector<16x1xf32>
    %196 = math.rsqrt %195 : vector<16x1xf32>
    %197 = vector.broadcast %196 : vector<16x1xf32> to vector<16x32xf32>
    %198 = arith.mulf %193, %197 : vector<16x32xf32>
    %199 = vector.broadcast %43 : vector<1x32xf32> to vector<16x32xf32>
    %200 = arith.mulf %198, %199 : vector<16x32xf32>
    %201 = vector.broadcast %44 : vector<1x32xf32> to vector<16x32xf32>
    %202 = arith.addf %200, %201 : vector<16x32xf32>
    %c1 = arith.constant 1 : index
    %c0_62 = arith.constant 0 : index
    %c0_63 = arith.constant 0 : index
    %203 = vector.load %arg3[%c1, %c0_62, %c0_63] : memref<2x32x96xbf16, #tpu.memory_space<vmem>>, vector<1x32x96xbf16>
    %204 = vector.shape_cast %203 : vector<1x32x96xbf16> to vector<32x96xbf16>
    %c1_64 = arith.constant 1 : index
    %c0_65 = arith.constant 0 : index
    %c0_66 = arith.constant 0 : index
    %205 = vector.load %arg4[%c1_64, %c0_65, %c0_66] : memref<2x32x32xbf16, #tpu.memory_space<vmem>>, vector<1x32x32xbf16>
    %206 = vector.shape_cast %205 : vector<1x32x32xbf16> to vector<32x32xbf16>
    %c1_67 = arith.constant 1 : index
    %c0_68 = arith.constant 0 : index
    %c0_69 = arith.constant 0 : index
    %207 = vector.load %arg5[%c1_67, %c0_68, %c0_69] : memref<2x32x128xbf16, #tpu.memory_space<vmem>>, vector<1x32x128xbf16>
    %208 = vector.shape_cast %207 : vector<1x32x128xbf16> to vector<32x128xbf16>
    %c1_70 = arith.constant 1 : index
    %c0_71 = arith.constant 0 : index
    %c0_72 = arith.constant 0 : index
    %209 = vector.load %arg6[%c1_70, %c0_71, %c0_72] : memref<2x128x32xbf16, #tpu.memory_space<vmem>>, vector<1x128x32xbf16>
    %210 = vector.shape_cast %209 : vector<1x128x32xbf16> to vector<128x32xbf16>
    %c1_73 = arith.constant 1 : index
    %c0_74 = arith.constant 0 : index
    %c0_75 = arith.constant 0 : index
    %211 = vector.load %arg7[%c1_73, %c0_74, %c0_75] : memref<2x8x128xf32, #tpu.memory_space<vmem>>, vector<1x8x128xf32>
    %212 = vector.shape_cast %211 : vector<1x8x128xf32> to vector<8x128xf32>
    %213 = vector.extract_strided_slice %212 {offsets = [0, 0], sizes = [1, 96], strides = [1, 1]} : vector<8x128xf32> to vector<1x96xf32>
    %214 = vector.extract_strided_slice %212 {offsets = [1, 0], sizes = [1, 32], strides = [1, 1]} : vector<8x128xf32> to vector<1x32xf32>
    %215 = vector.extract_strided_slice %212 {offsets = [2, 0], sizes = [1, 32], strides = [1, 1]} : vector<8x128xf32> to vector<1x32xf32>
    %216 = vector.extract_strided_slice %212 {offsets = [3, 0], sizes = [1, 32], strides = [1, 1]} : vector<8x128xf32> to vector<1x32xf32>
    %217 = vector.extract_strided_slice %212 {offsets = [4, 0], sizes = [1, 128], strides = [1, 1]} : vector<8x128xf32> to vector<1x128xf32>
    %218 = vector.extract_strided_slice %212 {offsets = [5, 0], sizes = [1, 32], strides = [1, 1]} : vector<8x128xf32> to vector<1x32xf32>
    %219 = vector.extract_strided_slice %212 {offsets = [6, 0], sizes = [1, 32], strides = [1, 1]} : vector<8x128xf32> to vector<1x32xf32>
    %220 = vector.extract_strided_slice %212 {offsets = [7, 0], sizes = [1, 32], strides = [1, 1]} : vector<8x128xf32> to vector<1x32xf32>
    %221 = arith.truncf %202 : vector<16x32xf32> to vector<16x32xbf16>
    %cst_76 = arith.constant dense<0.000000e+00> : vector<16x96xf32>
    %222 = tpu.matmul %221, %204, %cst_76 {dimension_numbers = #tpu.dot_dimension_numbers<[1], [0], [0], [1], [0, 0, 1, 1], [], []>} : vector<16x32xbf16>, vector<32x96xbf16>, vector<16x96xf32> -> vector<16x96xf32>
    %223 = vector.broadcast %213 : vector<1x96xf32> to vector<16x96xf32>
    %224 = arith.addf %222, %223 : vector<16x96xf32>
    %225 = vector.extract_strided_slice %224 {offsets = [0, 0], sizes = [16, 32], strides = [1, 1]} : vector<16x96xf32> to vector<16x32xf32>
    %226 = arith.truncf %225 : vector<16x32xf32> to vector<16x32xbf16>
    %227 = vector.extract_strided_slice %224 {offsets = [0, 32], sizes = [16, 32], strides = [1, 1]} : vector<16x96xf32> to vector<16x32xf32>
    %228 = arith.truncf %227 : vector<16x32xf32> to vector<16x32xbf16>
    %229 = vector.extract_strided_slice %224 {offsets = [0, 64], sizes = [16, 32], strides = [1, 1]} : vector<16x96xf32> to vector<16x32xf32>
    %230 = arith.truncf %229 : vector<16x32xf32> to vector<16x32xbf16>
    %231 = vector.extract_strided_slice %226 {offsets = [0, 0], sizes = [16, 8], strides = [1, 1]} : vector<16x32xbf16> to vector<16x8xbf16>
    %232 = vector.extract_strided_slice %228 {offsets = [0, 0], sizes = [16, 8], strides = [1, 1]} : vector<16x32xbf16> to vector<16x8xbf16>
    %233 = vector.extract_strided_slice %230 {offsets = [0, 0], sizes = [16, 8], strides = [1, 1]} : vector<16x32xbf16> to vector<16x8xbf16>
    %cst_77 = arith.constant dense<0.000000e+00> : vector<16x16xf32>
    %234 = tpu.matmul %231, %232, %cst_77 {dimension_numbers = #tpu.dot_dimension_numbers<[1], [1], [0], [0], [0, 0, 1, 0], [], []>} : vector<16x8xbf16>, vector<16x8xbf16>, vector<16x16xf32> -> vector<16x16xf32>
    %cst_78 = arith.constant 0.353553385 : f32
    %235 = vector.broadcast %cst_78 : f32 to vector<16x16xf32>
    %236 = arith.mulf %234, %235 : vector<16x16xf32>
    %237 = arith.addf %236, %1 : vector<16x16xf32>
    %cst_79 = arith.constant dense<0xFF800000> : vector<16xf32>
    %238 = vector.multi_reduction <maximumf>, %237, %cst_79 [1] : vector<16x16xf32> to vector<16xf32>
    %239 = vector.shape_cast %238 : vector<16xf32> to vector<16x1xf32>
    %240 = vector.broadcast %239 : vector<16x1xf32> to vector<16x16xf32>
    %241 = arith.subf %237, %240 : vector<16x16xf32>
    %242 = math.exp %241 : vector<16x16xf32>
    %cst_80 = arith.constant dense<0.000000e+00> : vector<16xf32>
    %243 = vector.multi_reduction <add>, %242, %cst_80 [1] : vector<16x16xf32> to vector<16xf32>
    %244 = vector.shape_cast %243 : vector<16xf32> to vector<16x1xf32>
    %245 = tpu.reciprocal %244 {approx = true} : vector<16x1xf32> -> vector<16x1xf32>
    %246 = vector.broadcast %245 : vector<16x1xf32> to vector<16x16xf32>
    %247 = arith.mulf %242, %246 : vector<16x16xf32>
    %248 = arith.truncf %247 : vector<16x16xf32> to vector<16x16xbf16>
    %cst_81 = arith.constant dense<0.000000e+00> : vector<16x8xf32>
    %249 = tpu.matmul %248, %233, %cst_81 {dimension_numbers = #tpu.dot_dimension_numbers<[1], [0], [0], [1], [0, 0, 1, 1], [], []>} : vector<16x16xbf16>, vector<16x8xbf16>, vector<16x8xf32> -> vector<16x8xf32>
    %250 = vector.extract_strided_slice %226 {offsets = [0, 8], sizes = [16, 8], strides = [1, 1]} : vector<16x32xbf16> to vector<16x8xbf16>
    %251 = vector.extract_strided_slice %228 {offsets = [0, 8], sizes = [16, 8], strides = [1, 1]} : vector<16x32xbf16> to vector<16x8xbf16>
    %252 = vector.extract_strided_slice %230 {offsets = [0, 8], sizes = [16, 8], strides = [1, 1]} : vector<16x32xbf16> to vector<16x8xbf16>
    %cst_82 = arith.constant dense<0.000000e+00> : vector<16x16xf32>
    %253 = tpu.matmul %250, %251, %cst_82 {dimension_numbers = #tpu.dot_dimension_numbers<[1], [1], [0], [0], [0, 0, 1, 0], [], []>} : vector<16x8xbf16>, vector<16x8xbf16>, vector<16x16xf32> -> vector<16x16xf32>
    %cst_83 = arith.constant 0.353553385 : f32
    %254 = vector.broadcast %cst_83 : f32 to vector<16x16xf32>
    %255 = arith.mulf %253, %254 : vector<16x16xf32>
    %256 = arith.addf %255, %1 : vector<16x16xf32>
    %cst_84 = arith.constant dense<0xFF800000> : vector<16xf32>
    %257 = vector.multi_reduction <maximumf>, %256, %cst_84 [1] : vector<16x16xf32> to vector<16xf32>
    %258 = vector.shape_cast %257 : vector<16xf32> to vector<16x1xf32>
    %259 = vector.broadcast %258 : vector<16x1xf32> to vector<16x16xf32>
    %260 = arith.subf %256, %259 : vector<16x16xf32>
    %261 = math.exp %260 : vector<16x16xf32>
    %cst_85 = arith.constant dense<0.000000e+00> : vector<16xf32>
    %262 = vector.multi_reduction <add>, %261, %cst_85 [1] : vector<16x16xf32> to vector<16xf32>
    %263 = vector.shape_cast %262 : vector<16xf32> to vector<16x1xf32>
    %264 = tpu.reciprocal %263 {approx = true} : vector<16x1xf32> -> vector<16x1xf32>
    %265 = vector.broadcast %264 : vector<16x1xf32> to vector<16x16xf32>
    %266 = arith.mulf %261, %265 : vector<16x16xf32>
    %267 = arith.truncf %266 : vector<16x16xf32> to vector<16x16xbf16>
    %cst_86 = arith.constant dense<0.000000e+00> : vector<16x8xf32>
    %268 = tpu.matmul %267, %252, %cst_86 {dimension_numbers = #tpu.dot_dimension_numbers<[1], [0], [0], [1], [0, 0, 1, 1], [], []>} : vector<16x16xbf16>, vector<16x8xbf16>, vector<16x8xf32> -> vector<16x8xf32>
    %269 = vector.extract_strided_slice %226 {offsets = [0, 16], sizes = [16, 8], strides = [1, 1]} : vector<16x32xbf16> to vector<16x8xbf16>
    %270 = vector.extract_strided_slice %228 {offsets = [0, 16], sizes = [16, 8], strides = [1, 1]} : vector<16x32xbf16> to vector<16x8xbf16>
    %271 = vector.extract_strided_slice %230 {offsets = [0, 16], sizes = [16, 8], strides = [1, 1]} : vector<16x32xbf16> to vector<16x8xbf16>
    %cst_87 = arith.constant dense<0.000000e+00> : vector<16x16xf32>
    %272 = tpu.matmul %269, %270, %cst_87 {dimension_numbers = #tpu.dot_dimension_numbers<[1], [1], [0], [0], [0, 0, 1, 0], [], []>} : vector<16x8xbf16>, vector<16x8xbf16>, vector<16x16xf32> -> vector<16x16xf32>
    %cst_88 = arith.constant 0.353553385 : f32
    %273 = vector.broadcast %cst_88 : f32 to vector<16x16xf32>
    %274 = arith.mulf %272, %273 : vector<16x16xf32>
    %275 = arith.addf %274, %1 : vector<16x16xf32>
    %cst_89 = arith.constant dense<0xFF800000> : vector<16xf32>
    %276 = vector.multi_reduction <maximumf>, %275, %cst_89 [1] : vector<16x16xf32> to vector<16xf32>
    %277 = vector.shape_cast %276 : vector<16xf32> to vector<16x1xf32>
    %278 = vector.broadcast %277 : vector<16x1xf32> to vector<16x16xf32>
    %279 = arith.subf %275, %278 : vector<16x16xf32>
    %280 = math.exp %279 : vector<16x16xf32>
    %cst_90 = arith.constant dense<0.000000e+00> : vector<16xf32>
    %281 = vector.multi_reduction <add>, %280, %cst_90 [1] : vector<16x16xf32> to vector<16xf32>
    %282 = vector.shape_cast %281 : vector<16xf32> to vector<16x1xf32>
    %283 = tpu.reciprocal %282 {approx = true} : vector<16x1xf32> -> vector<16x1xf32>
    %284 = vector.broadcast %283 : vector<16x1xf32> to vector<16x16xf32>
    %285 = arith.mulf %280, %284 : vector<16x16xf32>
    %286 = arith.truncf %285 : vector<16x16xf32> to vector<16x16xbf16>
    %cst_91 = arith.constant dense<0.000000e+00> : vector<16x8xf32>
    %287 = tpu.matmul %286, %271, %cst_91 {dimension_numbers = #tpu.dot_dimension_numbers<[1], [0], [0], [1], [0, 0, 1, 1], [], []>} : vector<16x16xbf16>, vector<16x8xbf16>, vector<16x8xf32> -> vector<16x8xf32>
    %288 = vector.extract_strided_slice %226 {offsets = [0, 24], sizes = [16, 8], strides = [1, 1]} : vector<16x32xbf16> to vector<16x8xbf16>
    %289 = vector.extract_strided_slice %228 {offsets = [0, 24], sizes = [16, 8], strides = [1, 1]} : vector<16x32xbf16> to vector<16x8xbf16>
    %290 = vector.extract_strided_slice %230 {offsets = [0, 24], sizes = [16, 8], strides = [1, 1]} : vector<16x32xbf16> to vector<16x8xbf16>
    %cst_92 = arith.constant dense<0.000000e+00> : vector<16x16xf32>
    %291 = tpu.matmul %288, %289, %cst_92 {dimension_numbers = #tpu.dot_dimension_numbers<[1], [1], [0], [0], [0, 0, 1, 0], [], []>} : vector<16x8xbf16>, vector<16x8xbf16>, vector<16x16xf32> -> vector<16x16xf32>
    %cst_93 = arith.constant 0.353553385 : f32
    %292 = vector.broadcast %cst_93 : f32 to vector<16x16xf32>
    %293 = arith.mulf %291, %292 : vector<16x16xf32>
    %294 = arith.addf %293, %1 : vector<16x16xf32>
    %cst_94 = arith.constant dense<0xFF800000> : vector<16xf32>
    %295 = vector.multi_reduction <maximumf>, %294, %cst_94 [1] : vector<16x16xf32> to vector<16xf32>
    %296 = vector.shape_cast %295 : vector<16xf32> to vector<16x1xf32>
    %297 = vector.broadcast %296 : vector<16x1xf32> to vector<16x16xf32>
    %298 = arith.subf %294, %297 : vector<16x16xf32>
    %299 = math.exp %298 : vector<16x16xf32>
    %cst_95 = arith.constant dense<0.000000e+00> : vector<16xf32>
    %300 = vector.multi_reduction <add>, %299, %cst_95 [1] : vector<16x16xf32> to vector<16xf32>
    %301 = vector.shape_cast %300 : vector<16xf32> to vector<16x1xf32>
    %302 = tpu.reciprocal %301 {approx = true} : vector<16x1xf32> -> vector<16x1xf32>
    %303 = vector.broadcast %302 : vector<16x1xf32> to vector<16x16xf32>
    %304 = arith.mulf %299, %303 : vector<16x16xf32>
    %305 = arith.truncf %304 : vector<16x16xf32> to vector<16x16xbf16>
    %cst_96 = arith.constant dense<0.000000e+00> : vector<16x8xf32>
    %306 = tpu.matmul %305, %290, %cst_96 {dimension_numbers = #tpu.dot_dimension_numbers<[1], [0], [0], [1], [0, 0, 1, 1], [], []>} : vector<16x16xbf16>, vector<16x8xbf16>, vector<16x8xf32> -> vector<16x8xf32>
    %307 = tpu.concatenate %249, %268, %287, %306 in 1 : vector<16x8xf32>, vector<16x8xf32>, vector<16x8xf32>, vector<16x8xf32> -> vector<16x32xf32>
    %308 = arith.truncf %307 : vector<16x32xf32> to vector<16x32xbf16>
    %cst_97 = arith.constant dense<0.000000e+00> : vector<16x32xf32>
    %309 = tpu.matmul %308, %206, %cst_97 {dimension_numbers = #tpu.dot_dimension_numbers<[1], [0], [0], [1], [0, 0, 1, 1], [], []>} : vector<16x32xbf16>, vector<32x32xbf16>, vector<16x32xf32> -> vector<16x32xf32>
    %310 = vector.broadcast %214 : vector<1x32xf32> to vector<16x32xf32>
    %311 = arith.addf %309, %310 : vector<16x32xf32>
    %312 = arith.addf %202, %311 : vector<16x32xf32>
    %cst_98 = arith.constant dense<0.000000e+00> : vector<16xf32>
    %313 = vector.multi_reduction <add>, %312, %cst_98 [1] : vector<16x32xf32> to vector<16xf32>
    %314 = vector.shape_cast %313 : vector<16xf32> to vector<16x1xf32>
    %cst_99 = arith.constant 3.200000e+01 : f32
    %315 = vector.broadcast %cst_99 : f32 to vector<16x1xf32>
    %316 = arith.divf %314, %315 : vector<16x1xf32>
    %317 = vector.broadcast %316 : vector<16x1xf32> to vector<16x32xf32>
    %318 = arith.subf %312, %317 : vector<16x32xf32>
    %319 = arith.mulf %318, %318 : vector<16x32xf32>
    %cst_100 = arith.constant dense<0.000000e+00> : vector<16xf32>
    %320 = vector.multi_reduction <add>, %319, %cst_100 [1] : vector<16x32xf32> to vector<16xf32>
    %321 = vector.shape_cast %320 : vector<16xf32> to vector<16x1xf32>
    %cst_101 = arith.constant 3.200000e+01 : f32
    %322 = vector.broadcast %cst_101 : f32 to vector<16x1xf32>
    %323 = arith.divf %321, %322 : vector<16x1xf32>
    %324 = vector.broadcast %316 : vector<16x1xf32> to vector<16x32xf32>
    %325 = arith.subf %312, %324 : vector<16x32xf32>
    %cst_102 = arith.constant 9.99999974E-6 : f32
    %326 = vector.broadcast %cst_102 : f32 to vector<16x1xf32>
    %327 = arith.addf %323, %326 : vector<16x1xf32>
    %328 = math.rsqrt %327 : vector<16x1xf32>
    %329 = vector.broadcast %328 : vector<16x1xf32> to vector<16x32xf32>
    %330 = arith.mulf %325, %329 : vector<16x32xf32>
    %331 = vector.broadcast %215 : vector<1x32xf32> to vector<16x32xf32>
    %332 = arith.mulf %330, %331 : vector<16x32xf32>
    %333 = vector.broadcast %216 : vector<1x32xf32> to vector<16x32xf32>
    %334 = arith.addf %332, %333 : vector<16x32xf32>
    %335 = arith.truncf %334 : vector<16x32xf32> to vector<16x32xbf16>
    %cst_103 = arith.constant dense<0.000000e+00> : vector<16x128xf32>
    %336 = tpu.matmul %335, %208, %cst_103 {dimension_numbers = #tpu.dot_dimension_numbers<[1], [0], [0], [1], [0, 0, 1, 1], [], []>} : vector<16x32xbf16>, vector<32x128xbf16>, vector<16x128xf32> -> vector<16x128xf32>
    %337 = vector.broadcast %217 : vector<1x128xf32> to vector<16x128xf32>
    %338 = arith.addf %336, %337 : vector<16x128xf32>
    %339 = arith.mulf %338, %338 : vector<16x128xf32>
    %340 = arith.mulf %338, %339 : vector<16x128xf32>
    %cst_104 = arith.constant 4.471500e-02 : f32
    %341 = vector.broadcast %cst_104 : f32 to vector<16x128xf32>
    %342 = arith.mulf %341, %340 : vector<16x128xf32>
    %343 = arith.addf %338, %342 : vector<16x128xf32>
    %cst_105 = arith.constant 0.797884583 : f32
    %344 = vector.broadcast %cst_105 : f32 to vector<16x128xf32>
    %345 = arith.mulf %344, %343 : vector<16x128xf32>
    %346 = math.tanh %345 : vector<16x128xf32>
    %cst_106 = arith.constant 1.000000e+00 : f32
    %347 = vector.broadcast %cst_106 : f32 to vector<16x128xf32>
    %348 = arith.addf %347, %346 : vector<16x128xf32>
    %cst_107 = arith.constant 5.000000e-01 : f32
    %349 = vector.broadcast %cst_107 : f32 to vector<16x128xf32>
    %350 = arith.mulf %349, %348 : vector<16x128xf32>
    %351 = arith.mulf %338, %350 : vector<16x128xf32>
    %352 = arith.truncf %351 : vector<16x128xf32> to vector<16x128xbf16>
    %cst_108 = arith.constant dense<0.000000e+00> : vector<16x32xf32>
    %353 = tpu.matmul %352, %210, %cst_108 {dimension_numbers = #tpu.dot_dimension_numbers<[1], [0], [0], [1], [0, 0, 1, 1], [], []>} : vector<16x128xbf16>, vector<128x32xbf16>, vector<16x32xf32> -> vector<16x32xf32>
    %354 = vector.broadcast %218 : vector<1x32xf32> to vector<16x32xf32>
    %355 = arith.addf %353, %354 : vector<16x32xf32>
    %356 = arith.addf %334, %355 : vector<16x32xf32>
    %cst_109 = arith.constant dense<0.000000e+00> : vector<16xf32>
    %357 = vector.multi_reduction <add>, %356, %cst_109 [1] : vector<16x32xf32> to vector<16xf32>
    %358 = vector.shape_cast %357 : vector<16xf32> to vector<16x1xf32>
    %cst_110 = arith.constant 3.200000e+01 : f32
    %359 = vector.broadcast %cst_110 : f32 to vector<16x1xf32>
    %360 = arith.divf %358, %359 : vector<16x1xf32>
    %361 = vector.broadcast %360 : vector<16x1xf32> to vector<16x32xf32>
    %362 = arith.subf %356, %361 : vector<16x32xf32>
    %363 = arith.mulf %362, %362 : vector<16x32xf32>
    %cst_111 = arith.constant dense<0.000000e+00> : vector<16xf32>
    %364 = vector.multi_reduction <add>, %363, %cst_111 [1] : vector<16x32xf32> to vector<16xf32>
    %365 = vector.shape_cast %364 : vector<16xf32> to vector<16x1xf32>
    %cst_112 = arith.constant 3.200000e+01 : f32
    %366 = vector.broadcast %cst_112 : f32 to vector<16x1xf32>
    %367 = arith.divf %365, %366 : vector<16x1xf32>
    %368 = vector.broadcast %360 : vector<16x1xf32> to vector<16x32xf32>
    %369 = arith.subf %356, %368 : vector<16x32xf32>
    %cst_113 = arith.constant 9.99999974E-6 : f32
    %370 = vector.broadcast %cst_113 : f32 to vector<16x1xf32>
    %371 = arith.addf %367, %370 : vector<16x1xf32>
    %372 = math.rsqrt %371 : vector<16x1xf32>
    %373 = vector.broadcast %372 : vector<16x1xf32> to vector<16x32xf32>
    %374 = arith.mulf %369, %373 : vector<16x32xf32>
    %375 = vector.broadcast %219 : vector<1x32xf32> to vector<16x32xf32>
    %376 = arith.mulf %374, %375 : vector<16x32xf32>
    %377 = vector.broadcast %220 : vector<1x32xf32> to vector<16x32xf32>
    %378 = arith.addf %376, %377 : vector<16x32xf32>
    %379 = vector.extract_strided_slice %2 {offsets = [2, 0], sizes = [1, 32], strides = [1, 1]} : vector<4x32xf32> to vector<1x32xf32>
    %380 = vector.extract_strided_slice %2 {offsets = [3, 0], sizes = [1, 32], strides = [1, 1]} : vector<4x32xf32> to vector<1x32xf32>
    %cst_114 = arith.constant dense<0.000000e+00> : vector<16xf32>
    %381 = vector.multi_reduction <add>, %378, %cst_114 [1] : vector<16x32xf32> to vector<16xf32>
    %382 = vector.shape_cast %381 : vector<16xf32> to vector<16x1xf32>
    %cst_115 = arith.constant 3.200000e+01 : f32
    %383 = vector.broadcast %cst_115 : f32 to vector<16x1xf32>
    %384 = arith.divf %382, %383 : vector<16x1xf32>
    %385 = vector.broadcast %384 : vector<16x1xf32> to vector<16x32xf32>
    %386 = arith.subf %378, %385 : vector<16x32xf32>
    %387 = arith.mulf %386, %386 : vector<16x32xf32>
    %cst_116 = arith.constant dense<0.000000e+00> : vector<16xf32>
    %388 = vector.multi_reduction <add>, %387, %cst_116 [1] : vector<16x32xf32> to vector<16xf32>
    %389 = vector.shape_cast %388 : vector<16xf32> to vector<16x1xf32>
    %cst_117 = arith.constant 3.200000e+01 : f32
    %390 = vector.broadcast %cst_117 : f32 to vector<16x1xf32>
    %391 = arith.divf %389, %390 : vector<16x1xf32>
    %392 = vector.broadcast %384 : vector<16x1xf32> to vector<16x32xf32>
    %393 = arith.subf %378, %392 : vector<16x32xf32>
    %cst_118 = arith.constant 9.99999974E-6 : f32
    %394 = vector.broadcast %cst_118 : f32 to vector<16x1xf32>
    %395 = arith.addf %391, %394 : vector<16x1xf32>
    %396 = math.rsqrt %395 : vector<16x1xf32>
    %397 = vector.broadcast %396 : vector<16x1xf32> to vector<16x32xf32>
    %398 = arith.mulf %393, %397 : vector<16x32xf32>
    %399 = vector.broadcast %379 : vector<1x32xf32> to vector<16x32xf32>
    %400 = arith.mulf %398, %399 : vector<16x32xf32>
    %401 = vector.broadcast %380 : vector<1x32xf32> to vector<16x32xf32>
    %402 = arith.addf %400, %401 : vector<16x32xf32>
    %403 = arith.truncf %402 : vector<16x32xf32> to vector<16x32xbf16>
    %c0_119 = arith.constant 0 : index
    %c0_120 = arith.constant 0 : index
    %404 = vector.load %arg8[%c0_119, %c0_120] : memref<32x128xbf16, #tpu.memory_space<vmem>>, vector<32x128xbf16>
    %cst_121 = arith.constant dense<0.000000e+00> : vector<16x128xf32>
    %405 = tpu.matmul %403, %404, %cst_121 {dimension_numbers = #tpu.dot_dimension_numbers<[1], [0], [0], [1], [0, 0, 1, 1], [], []>} : vector<16x32xbf16>, vector<32x128xbf16>, vector<16x128xf32> -> vector<16x128xf32>
    %c0_122 = arith.constant 0 : index
    %c0_123 = arith.constant 0 : index
    %406 = vector.load %arg9[%c0_122, %c0_123] : memref<16x128xf32, #tpu.memory_space<vmem>>, vector<16x128xf32>
    tpu.vector_store %arg9[%c0_122, %c0_123], %405 {strides = array<i32>} : memref<16x128xf32, #tpu.memory_space<vmem>>, vector<16x128xf32>,
    return
  }
}

</mosaic_0001>

<bundles_post_ra>
// kernel: bert_forward.1
= control target key start
LH: loop header
LB: loop body
LE: loop exit
PB: predicated region body
PF: predicated region fallthrough
CT: control target
= control target key end

     0   :  { %vm39_vm0 = vcmask 261120   ;;  %s2281_s0 = inlined_call_operand.vmem [shape: f32[16,32], index: 0, kind: input, shape index: {}]   ;;  %s2282_s1 = inlined_call_operand.vmem [shape: f32[16,16], index: 1, kind: input, shape index: {}]   ;;  %s2283_s2 = inlined_call_operand.vmem [shape: f32[4,32], index: 2, kind: input, shape index: {}]   ;;  %s2284_s3 = inlined_call_operand.vmem [shape: bf16[2,32,96], index: 3, kind: input, shape index: {}]   ;;  %s2285_s4 = inlined_call_operand.vmem [shape: bf16[2,32,32], index: 4, kind: input, shape index: {}]   ;;  %s2286_s5 = inlined_call_operand.vmem [shape: bf16[2,32,128], index: 5, kind: input, shape index: {}]   ;;  %s2287_s6 = inlined_call_operand.vmem [shape: bf16[2,128,32], index: 6, kind: input, shape index: {}]   ;;  %s2288_s7 = inlined_call_operand.vmem [shape: f32[2,8,128], index: 7, kind: input, shape index: {}]   ;;  %s2289_s8 = inlined_call_operand.vmem [shape: bf16[32,128], index: 8, kind: input, shape index: {}]   ;;  %s2290_s9 = inlined_call_operand.hbm [shape: f32[16,128], index: 9, kind: output, shape index: {}]  }
   0x1   :  { %v34_v0 = vld [vmem:[%s2281_s0] sm:$0xff] }
   0x2   :  { %14 = vsyncpa [#allocation3], 0  ;;  %v40_v1 = vsel %vm39_vm0, %v34_v0, 0.0  ;;  %v35_v2 = vld [vmem:[%s2281_s0 + $0x8] sm:$0xff]  ;;  %v1837_v4 = vmov 32.0   ;;  %v1635_v23 = vld [vmem:[%s2284_s3] sm:$0xff] }
   0x3   :  { %41 = vadd.xlane.f32.xlu0 %v40_v1  ;;  %v43_v3 = vsel %vm39_vm0, %v35_v2, 0.0  ;;  %1712 = vrcp.f32 %v1837_v4  ;;  %v1636_v21 = vld [vmem:[%s2284_s3 + $0x8] sm:$0xff]  ;;  %v38_v40 = vld [vmem:[%s2283_s2] sm:$0xf]  ;;  %s1838_s20 = smov 72   ;;  %s1839_s21 = smov 96  }
   0x4   :  { %149 = vmatpush.bf16.msra.mxu0 %v1636_v21  ;;  %v91_v43 = vperm.slane %v38_v40, 0  ;;  %v94_v48 = vperm.slane %v38_v40, 1  ;;  %v1939_v53 = vld [vmem:[%s2288_s7] sm:$0xff]  ;;  %s1840_s22 = smov 88   ;;  %s1841_s23 = smov 120   ;;  %vm166_vm8 = vcmask 64512  }
   0x5   :  { %v127_v55 = vperm.slane %v1939_v53, 0  ;;  %s1842_s24 = smov 104   ;;  %s1843_s25 = smov 80   ;;  %vm191_vm9 = vcmask 130048   ;;  %vm476_vm10 = vcmask 195584  }
   0x6   :  { %s1844_s26 = smov 112   ;;  %s1846_s10 = smov 64  }
   0x7   :  { %s1847_s11 = smov 40   ;;  %s1848_s12 = smov 48  }
   0x8   :  { %150 = vmatpush.bf16.msra.mxu0 %v1635_v23  ;;  %s1849_s0 = smov 8   ;;  %s2291_s13 = smov 16  }
   0x9   :  { %v1713_v5 = vpop.eup %1712  ;;  %s1851_s14 = smov 24  }
   0xa   :  { %v47_v6 = vmul.f32 32.0, %v1713_v5  ;;  %vm51_vm1 = vweird.f32 %v1713_v5 }
   0xb   :  { %44 = vadd.xlane.f32.xlu0 %v43_v3 }
   0xc   :  { %v48_v7 = vsub.f32 1.0, %v47_v6 }
   0xe   :  { %v49_v8 = vmul.f32 %v1713_v5, %v48_v7 }
  0x10   :  { %v50_v9 = vadd.f32 %v1713_v5, %v49_v8 }
  0x12   :  { %v1912_v10 = vsel %vm51_vm1, %v1713_v5, %v50_v9 }
  0x76   :  { %v42_v11 = vpop.xlane.xlu0 %41 }
  0x77   :  { %v53_v12 = vmul.f32 %v1912_v10, %v42_v11 }
  0x79   :  { %v55_v13 = vsub.f32 %v34_v0, %v53_v12 }
  0x7b   :  { %v57_v14 = vmul.f32 %v55_v13, %v55_v13 }
  0x7d   :  { %v59_v15 = vsel %vm39_vm0, %v57_v14, 0.0 }
  0x7e   :  { %60 = vadd.xlane.f32.xlu1 %v59_v15  ;;  %v45_v16 = vpop.xlane.xlu0 %44 }
  0x7f   :  { %v54_v17 = vmul.f32 %v1912_v10, %v45_v16 }
  0x81   :  { %v56_v18 = vsub.f32 %v35_v2, %v54_v17 }
  0x83   :  { %v58_v19 = vmul.f32 %v56_v18, %v56_v18 }
  0x85   :  { %v62_v20 = vsel %vm39_vm0, %v58_v19, 0.0 }
  0x86   :  { %63 = vadd.xlane.f32.xlu1 %v62_v20 }
  0xf1   :  { %v61_v22 = vpop.xlane.xlu1 %60 }
  0xf2   :  { %v65_v24 = vmul.f32 %v61_v22, %v1912_v10 }
  0xf4   :  { %v67_v25 = vadd.f32 1e-05, %v65_v24 }
  0xf6   :  { %1714 = vrsqrt.f32 %v67_v25  ;;  %vm75_vm3 = vweird.f32 %v67_v25 }
  0xf9   :  { %v64_v26 = vpop.xlane.xlu1 %63 }
  0xfa   :  { %v66_v27 = vmul.f32 %v64_v26, %v1912_v10 }
  0xfc   :  { %v1715_v28 = vpop.eup %1714  ;;  %v68_v29 = vadd.f32 1e-05, %v66_v27 }
  0xfd   :  { %v70_v30 = vmul.f32 %v1715_v28, %v67_v25  ;;  %vm76_vm2 = vweird.f32 %v1715_v28 }
  0xfe   :  { %1716 = vrsqrt.f32 %v68_v29  ;;  %vm77_vm4 = vmor %vm75_vm3, %vm76_vm2  ;;  %vm85_vm6 = vweird.f32 %v68_v29 }
  0xff   :  { %v71_v31 = vmul.f32 %v1715_v28, %v70_v30 }
 0x101   :  { %v72_v32 = vmul.f32 0.5, %v71_v31 }
 0x103   :  { %v73_v33 = vsub.f32 1.5, %v72_v32 }
 0x104   :  { %v1717_v34 = vpop.eup %1716 }
 0x105   :  { %v74_v35 = vmul.f32 %v1715_v28, %v73_v33  ;;  %v80_v36 = vmul.f32 %v1717_v34, %v68_v29  ;;  %vm86_vm5 = vweird.f32 %v1717_v34 }
 0x106   :  { %vm87_vm7 = vmor %vm85_vm6, %vm86_vm5 }
 0x107   :  { %v81_v37 = vmul.f32 %v1717_v34, %v80_v36  ;;  %v78_v38 = vsel %vm77_vm4, %v1715_v28, %v74_v35 }
 0x108   :  { %v89_v42 = vmul.f32 %v78_v38, %v55_v13  ;;  %v1970_v13 = vld [vmem:[%s2282_s1] sm:$0xff] }
 0x109   :  { %v82_v39 = vmul.f32 0.5, %v81_v37 }
 0x10a   :  { %v92_v47 = vmul.f32 %v91_v43, %v89_v42 }
 0x10b   :  { %v83_v41 = vsub.f32 1.5, %v82_v39 }
 0x10c   :  { %v1929_v50 = vadd.f32 %v94_v48, %v92_v47 }
 0x10d   :  { %v84_v44 = vmul.f32 %v1717_v34, %v83_v41 }
 0x10f   :  { %v88_v45 = vsel %vm87_vm7, %v1717_v34, %v84_v44 }
 0x110   :  { %v90_v46 = vmul.f32 %v88_v45, %v56_v18  ;;  %v1977_v18 = vld [vmem:[%s2282_s1 + $0x8] sm:$0xff]  ;;  %s1845_s1 = smov 56  }
 0x112   :  { %v93_v49 = vmul.f32 %v91_v43, %v90_v46 }
 0x114   :  { %v1931_v51 = vadd.f32 %v94_v48, %v93_v49 }
 0x116   :  { %v126_v52 = vpack.c.bf16 %v1931_v51, %v1929_v50 }
 0x118   :  { %1471 = vmatmul.msk.bf16.vlgmr.msra.gmra.mxu0 %vm39_vm0, %v126_v52 }
 0x195   :  { %v152_v54 = vpop.f32.mrf.mxu0 }
 0x196   :  { %v153_v56 = vadd.f32 %v152_v54, %v127_v55 }
 0x198   :  { %v157_v58 = vpack.c.bf16 %v153_v56, %v153_v56 }
 0x19a   :  { %v161_v61 = vunpack.c.l.b16 %v157_v58 }
 0x19d   :  { %v154_v57 = vpop.f32.mrf.mxu0 }
 0x19e   :  { %v155_v59 = vadd.f32 %v154_v57, %v127_v55 }
 0x1a0   :  { %v158_v60 = vpack.c.bf16 %v155_v59, %v155_v59 }
 0x1a2   :  { %v162_v62 = vunpack.c.l.b16 %v158_v60 }
 0x1a4   :  { %v1942_v63 = vpack.c.b16 %v162_v62, %v161_v61 }
 0x1a6   :  { %379 = vrot.lane.b32.xlu1 %v1942_v63, %s1838_s20  ;;  %164 = vrot.lane.b32.xlu0 %v1942_v63, %s1839_s21 }
 0x1a7   :  { %237 = vrot.lane.b32.xlu2 %v1942_v63, %s1840_s22 }
 0x1af   :  { %235 = vrot.lane.b32.xlu2 %v1942_v63, %s1841_s23 }
 0x1b7   :  { %377 = vrot.lane.b32.xlu2 %v1942_v63, %s1842_s24 }
 0x1bf   :  { %308 = vrot.lane.b32.xlu2 %v1942_v63, %s1843_s25 }
 0x1c7   :  { %306 = vrot.lane.b32.xlu2 %v1942_v63, %s1844_s26 }
 0x201   :  { %v238_v0 = vpop.permute.xlu2 %237 }
 0x202   :  { %v243_v1 = vsel %vm166_vm8, %v238_v0, 0 }
 0x203   :  { %252 = vmatpush.bf16.xpose.msra.mxu3 %v243_v1 }
 0x209   :  { %v236_v2 = vpop.permute.xlu2 %235 }
 0x20a   :  { %1474 = vmatmul.msk.bf16.vlgmr.msra.gmra.mxu3 %vm166_vm8, %v236_v2 }
 0x211   :  { %v378_v3 = vpop.permute.xlu2 %377 }
 0x218   :  { %v380_v4 = vpop.permute.xlu1 %379  ;;  %v165_v5 = vpop.permute.xlu0 %164 }
 0x219   :  { %v309_v6 = vpop.permute.xlu2 %308  ;;  %v171_v7 = vsel %vm166_vm8, %v165_v5, 0  ;;  %v385_v8 = vsel %vm166_vm8, %v380_v4, 0 }
 0x21a   :  { %180 = vmatpush.bf16.xpose.msra.mxu1 %v171_v7  ;;  %v314_v9 = vsel %vm166_vm8, %v309_v6, 0  ;;  %394 = vmatpush.bf16.xpose.msrb.mxu3 %v385_v8 }
 0x21b   :  { %323 = vmatpush.bf16.xpose.msrb.mxu0 %v314_v9 }
 0x221   :  { %v307_v11 = vpop.permute.xlu2 %306  ;;  %1472 = vmatmul.msk.bf16.vlgmr.msra.gmra.mxu1 %vm166_vm8, %v1942_v63  ;;  %1478 = vmatmul.msk.bf16.vlgmr.msrb.gmra.mxu3 %vm166_vm8, %v378_v3 }
 0x222   :  { %1476 = vmatmul.msk.bf16.vlgmr.msrb.gmra.mxu0 %vm166_vm8, %v307_v11 }
 0x28d   :  { %v254_v12 = vpop.f32.mrf.mxu3 }
 0x28e   :  { %v259_v14 = vmul.f32 0.35355338, %v254_v12 }
 0x290   :  { %v261_v15 = vadd.f32 %v259_v14, %v1970_v13 }
 0x292   :  { %v263_v16 = vsel %vm191_vm9, %v261_v15, -inf }
 0x293   :  { %264 = vmax.xlane.f32.xlu0 %v263_v16 }
 0x295   :  { %v256_v17 = vpop.f32.mrf.mxu3 }
 0x296   :  { %v260_v19 = vmul.f32 0.35355338, %v256_v17 }
 0x298   :  { %v262_v20 = vadd.f32 %v260_v19, %v1977_v18 }
 0x29a   :  { %v266_v21 = vsel %vm191_vm9, %v262_v20, -inf }
 0x29b   :  { %267 = vmax.xlane.f32.xlu2 %v266_v21 }
 0x29e   :  { %v182_v22 = vpop.f32.mrf.mxu1 }
 0x29f   :  { %v187_v23 = vmul.f32 0.35355338, %v182_v22  ;;  %v325_v24 = vpop.f32.mrf.mxu0 }
 0x2a0   :  { %v330_v36 = vmul.f32 0.35355338, %v325_v24 }
 0x2a1   :  { %v189_v25 = vadd.f32 %v187_v23, %v1970_v13 }
 0x2a2   :  { %v1990_v42 = vadd.f32 %v330_v36, %v1970_v13 }
 0x2a3   :  { %v192_v26 = vsel %vm191_vm9, %v189_v25, -inf }
 0x2a4   :  { %193 = vmax.xlane.f32.xlu1 %v192_v26  ;;  %v396_v27 = vpop.f32.mrf.mxu3  ;;  %v334_v45 = vsel %vm191_vm9, %v1990_v42, -inf }
 0x2a5   :  { %v401_v28 = vmul.f32 0.35355338, %v396_v27 }
 0x2a6   :  { %v184_v29 = vpop.f32.mrf.mxu1 }
 0x2a7   :  { %v188_v30 = vmul.f32 0.35355338, %v184_v29  ;;  %v327_v31 = vpop.f32.mrf.mxu0  ;;  %v403_v32 = vadd.f32 %v401_v28, %v1970_v13 }
 0x2a8   :  { %v331_v33 = vmul.f32 0.35355338, %v327_v31 }
 0x2a9   :  { %v405_v34 = vsel %vm191_vm9, %v403_v32, -inf  ;;  %v190_v35 = vadd.f32 %v188_v30, %v1977_v18 }
 0x2aa   :  { %406 = vmax.xlane.f32.xlu2 %v405_v34  ;;  %v333_v40 = vadd.f32 %v331_v33, %v1977_v18 }
 0x2ab   :  { %v195_v37 = vsel %vm191_vm9, %v190_v35, -inf }
 0x2ac   :  { %196 = vmax.xlane.f32.xlu0 %v195_v37  ;;  %v398_v38 = vpop.f32.mrf.mxu3  ;;  %v337_v44 = vsel %vm191_vm9, %v333_v40, -inf }
 0x2ad   :  { %v402_v39 = vmul.f32 0.35355338, %v398_v38 }
 0x2af   :  { %v404_v41 = vadd.f32 %v402_v39, %v1977_v18 }
 0x2b1   :  { %v408_v43 = vsel %vm191_vm9, %v404_v41, -inf }
 0x2b2   :  { %409 = vmax.xlane.f32.xlu1 %v408_v43  ;;  %338 = vmax.xlane.f32.xlu2 %v337_v44 }
 0x2b4   :  { %335 = vmax.xlane.f32.xlu0 %v334_v45 }
 0x306   :  { %v265_v46 = vpop.xlane.xlu0 %264 }
 0x307   :  { %v269_v47 = vsub.f32 %v261_v15, %v265_v46 }
 0x309   :  { %v271_v48 = vmul.f32 1.442695, %v269_v47 }
 0x30b   :  { %1718 = vpow2.f32 %v271_v48 }
 0x30e   :  { %v268_v49 = vpop.xlane.xlu2 %267 }
 0x30f   :  { %v270_v52 = vsub.f32 %v262_v20, %v268_v49 }
 0x311   :  { %v1996_v54 = vpop.eup %1718  ;;  %v273_v55 = vmul.f32 1.442695, %v270_v52 }
 0x312   :  { %v275_v56 = vsel %vm191_vm9, %v1996_v54, 0.0 }
 0x313   :  { %1720 = vpow2.f32 %v273_v55  ;;  %276 = vadd.xlane.f32.xlu1 %v275_v56 }
 0x317   :  { %v194_v57 = vpop.xlane.xlu1 %193 }
 0x318   :  { %v198_v58 = vsub.f32 %v189_v25, %v194_v57 }
 0x319   :  { %v1721_v59 = vpop.eup %1720 }
 0x31a   :  { %v200_v60 = vmul.f32 1.442695, %v198_v58  ;;  %v278_v61 = vsel %vm191_vm9, %v1721_v59, 0.0 }
 0x31b   :  { %279 = vadd.xlane.f32.xlu0 %v278_v61 }
 0x31c   :  { %1722 = vpow2.f32 %v200_v60 }
 0x31d   :  { %v407_v62 = vpop.xlane.xlu2 %406 }
 0x31e   :  { %v411_v9 = vsub.f32 %v403_v32, %v407_v62 }
 0x31f   :  { %v197_v0 = vpop.xlane.xlu0 %196 }
 0x320   :  { %v199_v1 = vsub.f32 %v190_v35, %v197_v0  ;;  %v413_v12 = vmul.f32 1.442695, %v411_v9 }
 0x322   :  { %v2001_v2 = vpop.eup %1722  ;;  %v202_v3 = vmul.f32 1.442695, %v199_v1 }
 0x323   :  { %v204_v4 = vsel %vm191_vm9, %v2001_v2, 0.0 }
 0x324   :  { %1724 = vpow2.f32 %v202_v3  ;;  %205 = vadd.xlane.f32.xlu2 %v204_v4 }
 0x325   :  { %v339_v5 = vpop.xlane.xlu2 %338  ;;  %v410_v14 = vpop.xlane.xlu1 %409 }
 0x326   :  { %v341_v6 = vsub.f32 %v333_v40, %v339_v5  ;;  %v412_v16 = vsub.f32 %v404_v41, %v410_v14  ;;  %v1637_v14 = vld [vmem:[%s2285_s4] sm:$0xff] }
 0x327   :  { %v336_v24 = vpop.xlane.xlu0 %335 }
 0x328   :  { %v344_v7 = vmul.f32 1.442695, %v341_v6  ;;  %v415_v19 = vmul.f32 1.442695, %v412_v16  ;;  %v340_v25 = vsub.f32 %v1990_v42, %v336_v24 }
 0x32a   :  { %v1725_v8 = vpop.eup %1724  ;;  %1726 = vpow2.f32 %v344_v7  ;;  %v342_v26 = vmul.f32 1.442695, %v340_v25 }
 0x32b   :  { %v207_v11 = vsel %vm191_vm9, %v1725_v8, 0.0  ;;  %1728 = vpow2.f32 %v413_v12  ;;  %v1638_v12 = vld [vmem:[%s2285_s4 + $0x8] sm:$0xff] }
 0x32c   :  { %208 = vadd.xlane.f32.xlu1 %v207_v11  ;;  %1730 = vpow2.f32 %v415_v19  ;;  %502 = vmatpush.bf16.msra.mxu0 %v1638_v12 }
 0x32d   :  { %1732 = vpow2.f32 %v342_v26 }
 0x32f   :  { %286 = vrot.lane.b32.xlu0 %v1942_v63, %s1845_s1 }
 0x330   :  { %v2008_v15 = vpop.eup %1726  ;;  %503 = vmatpush.bf16.msra.mxu0 %v1637_v14  ;;  %v559_v14 = vperm.slane %v1939_v53, 3 }
 0x331   :  { %v349_v17 = vsel %vm191_vm9, %v2008_v15, 0.0  ;;  %v1729_v20 = vpop.eup %1728 }
 0x332   :  { %v417_v21 = vsel %vm191_vm9, %v1729_v20, 0.0  ;;  %v1731_v22 = vpop.eup %1730 }
 0x333   :  { %v420_v23 = vsel %vm191_vm9, %v1731_v22, 0.0  ;;  %v1733_v27 = vpop.eup %1732 }
 0x334   :  { %350 = vadd.xlane.f32.xlu1 %v349_v17  ;;  %v346_v28 = vsel %vm191_vm9, %v1733_v27, 0.0 }
 0x33c   :  { %215 = vrot.lane.b32.xlu2 %v1942_v63, %s1846_s10  ;;  %418 = vadd.xlane.f32.xlu1 %v417_v21 }
 0x344   :  { %428 = vrot.lane.b32.xlu2 %v1942_v63, %s1847_s11  ;;  %421 = vadd.xlane.f32.xlu1 %v420_v23 }
 0x359   :  { %347 = vadd.xlane.f32.xlu0 %v346_v28 }
 0x35d   :  { %357 = vrot.lane.b32.xlu1 %v1942_v63, %s1848_s12 }
 0x386   :  { %v277_v30 = vpop.xlane.xlu1 %276 }
 0x38e   :  { %v280_v29 = vpop.xlane.xlu0 %279 }
 0x38f   :  { %1734 = vrcp.f32 %v280_v29 }
 0x390   :  { %1736 = vrcp.f32 %v277_v30 }
 0x395   :  { %v1735_v32 = vpop.eup %1734 }
 0x396   :  { %v1737_v33 = vpop.eup %1736  ;;  %v284_v36 = vmul.f32 %v1735_v32, %v1721_v59  ;;  %v480_v32 = vperm.slane %v1939_v53, 1 }
 0x397   :  { %v206_v31 = vpop.xlane.xlu2 %205  ;;  %v283_v38 = vmul.f32 %v1737_v33, %v1996_v54 }
 0x398   :  { %1738 = vrcp.f32 %v206_v31 }
 0x399   :  { %v285_v39 = vpack.c.bf16 %v284_v36, %v283_v38 }
 0x39e   :  { %v1739_v40 = vpop.eup %1738 }
 0x39f   :  { %v209_v34 = vpop.xlane.xlu1 %208  ;;  %v216_v35 = vpop.permute.xlu2 %215  ;;  %v212_v41 = vmul.f32 %v1739_v40, %v2001_v2 }
 0x3a0   :  { %1740 = vrcp.f32 %v209_v34  ;;  %228 = vmatpush.bf16.msrb.mxu1 %v216_v35 }
 0x3a1   :  { %v287_v37 = vpop.permute.xlu0 %286 }
 0x3a2   :  { %299 = vmatpush.bf16.msra.mxu2 %v287_v37 }
 0x3a5   :  { %1475 = vmatmul.msk.bf16.vlgmr.msra.gmra.mxu2 %vm191_vm9, %v285_v39 }
 0x3a6   :  { %v1741_v63 = vpop.eup %1740 }
 0x3a7   :  { %v213_v42 = vmul.f32 %v1741_v63, %v1725_v8  ;;  %v351_v43 = vpop.xlane.xlu1 %350  ;;  %v429_v44 = vpop.permute.xlu2 %428 }
 0x3a8   :  { %441 = vmatpush.bf16.msrb.mxu2 %v429_v44 }
 0x3a9   :  { %v214_v45 = vpack.c.bf16 %v213_v42, %v212_v41 }
 0x3ab   :  { %1473 = vmatmul.msk.bf16.vlgmr.msrb.gmra.mxu1 %vm191_vm9, %v214_v45 }
 0x3af   :  { %v419_v46 = vpop.xlane.xlu1 %418 }
 0x3b0   :  { %1742 = vrcp.f32 %v419_v46 }
 0x3b6   :  { %v1743_v48 = vpop.eup %1742 }
 0x3b7   :  { %v422_v47 = vpop.xlane.xlu1 %421  ;;  %v425_v52 = vmul.f32 %v1743_v48, %v1729_v20 }
 0x3b8   :  { %1744 = vrcp.f32 %v422_v47 }
 0x3b9   :  { %1746 = vrcp.f32 %v351_v43 }
 0x3be   :  { %v1745_v49 = vpop.eup %1744 }
 0x3bf   :  { %v426_v54 = vmul.f32 %v1745_v49, %v1731_v22  ;;  %v1747_v58 = vpop.eup %1746 }
 0x3c0   :  { %v355_v60 = vmul.f32 %v1747_v58, %v2008_v15 }
 0x3c1   :  { %v427_v55 = vpack.c.bf16 %v426_v54, %v425_v52  ;;  %v1639_v54 = vld [vmem:[%s2286_s5] sm:$0xff] }
 0x3c3   :  { %1479 = vmatmul.msk.bf16.vlgmr.msrb.gmra.mxu2 %vm191_vm9, %v427_v55 }
 0x3cc   :  { %v348_v56 = vpop.xlane.xlu0 %347 }
 0x3cd   :  { %1748 = vrcp.f32 %v348_v56 }
 0x3cf   :  { %v358_v57 = vpop.permute.xlu1 %357 }
 0x3d0   :  { %370 = vmatpush.bf16.msra.mxu1 %v358_v57 }
 0x3d3   :  { %v1749_v59 = vpop.eup %1748 }
 0x3d4   :  { %v354_v61 = vmul.f32 %v1749_v59, %v1733_v27 }
 0x3d6   :  { %v356_v62 = vpack.c.bf16 %v355_v60, %v354_v61 }
 0x3d8   :  { %1477 = vmatmul.msk.bf16.vlgmr.msra.gmra.mxu1 %vm191_vm9, %v356_v62 }
 0x428   :  { %v301_v0 = vpop.f32.mrf.mxu2  ;;  %v230_v3 = vpop.f32.mrf.mxu1 }
 0x430   :  { %v303_v1 = vpop.f32.mrf.mxu2  ;;  %v232_v4 = vpop.f32.mrf.mxu1 }
 0x431   :  { %v1682_v2 = vpack.i.bf16 %v303_v1, %v301_v0 }
 0x433   :  { %1683 = vrot.lane.b32.xlu2 %v1682_v2, %s1849_s0 }
 0x446   :  { %v443_v6 = vpop.f32.mrf.mxu2 }
 0x44e   :  { %v445_v9 = vpop.f32.mrf.mxu2 }
 0x44f   :  { %v1692_v11 = vpack.i.bf16 %v445_v9, %v443_v6 }
 0x455   :  { %v372_v5 = vpop.f32.mrf.mxu1 }
 0x45d   :  { %v374_v7 = vpop.f32.mrf.mxu1 }
 0x45e   :  { %v1687_v8 = vpack.i.bf16 %v374_v7, %v372_v5 }
 0x460   :  { %1688 = vrot.lane.b32.xlu2 %v1687_v8, %s2291_s13  ;;  %v556_v8 = vperm.slane %v1939_v53, 2 }
 0x468   :  { %1693 = vrot.lane.b32.xlu2 %v1692_v11, %s1851_s14 }
 0x48d   :  { %v1684_v15 = vpop.permute.xlu2 %1683 }
 0x48e   :  { %v1686_v17 = vunpack.i.h.bf16 %v1684_v15  ;;  %v1685_v19 = vunpack.i.l.bf16 %v1684_v15 }
 0x490   :  { %v473_v23 = vsel %vm166_vm8, %v232_v4, %v1686_v17  ;;  %v472_v24 = vsel %vm166_vm8, %v230_v3, %v1685_v19 }
 0x4ba   :  { %v1689_v16 = vpop.permute.xlu2 %1688 }
 0x4bb   :  { %v1691_v20 = vunpack.i.h.bf16 %v1689_v16  ;;  %v1690_v21 = vunpack.i.l.bf16 %v1689_v16 }
 0x4bd   :  { %v474_v27 = vsel %vm191_vm9, %v472_v24, %v1690_v21  ;;  %v475_v28 = vsel %vm191_vm9, %v473_v23, %v1691_v20  ;;  %v1647_v23 = vld [vmem:[%s2287_s6 + $0x30] sm:$0xff]  ;;  %v1646_v24 = vld [vmem:[%s2287_s6 + $0x28] sm:$0xff] }
 0x4c2   :  { %v1694_v22 = vpop.permute.xlu2 %1693 }
 0x4c3   :  { %v1696_v25 = vunpack.i.h.bf16 %v1694_v22  ;;  %v1695_v26 = vunpack.i.l.bf16 %v1694_v22  ;;  %v1648_v22 = vld [vmem:[%s2287_s6 + $0x38] sm:$0xff] }
 0x4c4   :  { %661 = vmatpush.bf16.msra.mxu3 %v1648_v22 }
 0x4c5   :  { %v477_v29 = vsel %vm476_vm10, %v474_v27, %v1695_v26  ;;  %v478_v30 = vsel %vm476_vm10, %v475_v28, %v1696_v25  ;;  %v1645_v25 = vld [vmem:[%s2287_s6 + $0x20] sm:$0xff]  ;;  %v1644_v26 = vld [vmem:[%s2287_s6 + $0x18] sm:$0xff]  ;;  %v1643_v27 = vld [vmem:[%s2287_s6 + $0x10] sm:$0xff] }
 0x4c6   :  { %v479_v31 = vpack.c.bf16 %v478_v30, %v477_v29  ;;  %v1642_v28 = vld [vmem:[%s2287_s6 + $0x8] sm:$0xff]  ;;  %v563_v29 = vperm.slane %v1939_v53, 4  ;;  %v1641_v30 = vld [vmem:[%s2287_s6] sm:$0xff] }
 0x4c8   :  { %1488 = vmatmul.msk.bf16.vlgmr.msra.gmra.mxu0 %vm39_vm0, %v479_v31  ;;  %662 = vmatpush.bf16.msra.mxu3 %v1647_v23 }
 0x4cc   :  { %663 = vmatpush.bf16.msra.mxu3 %v1646_v24 }
 0x4d0   :  { %664 = vmatpush.bf16.msra.mxu3 %v1645_v25 }
 0x4d4   :  { %665 = vmatpush.bf16.msra.mxu3 %v1644_v26 }
 0x4d8   :  { %666 = vmatpush.bf16.msra.mxu3 %v1643_v27 }
 0x4dc   :  { %667 = vmatpush.bf16.msra.mxu3 %v1642_v28 }
 0x4e0   :  { %668 = vmatpush.bf16.msra.mxu3 %v1641_v30 }
 0x545   :  { %v505_v33 = vpop.f32.mrf.mxu0 }
 0x546   :  { %v506_v34 = vadd.f32 %v505_v33, %v480_v32 }
 0x548   :  { %v510_v35 = vadd.f32 %v506_v34, %v1929_v50 }
 0x54a   :  { %v512_v36 = vsel %vm39_vm0, %v510_v35, 0.0 }
 0x54b   :  { %513 = vadd.xlane.f32.xlu1 %v512_v36 }
 0x54d   :  { %v507_v37 = vpop.f32.mrf.mxu0 }
 0x54e   :  { %v508_v38 = vadd.f32 %v507_v37, %v480_v32 }
 0x550   :  { %v511_v39 = vadd.f32 %v508_v38, %v1931_v51  ;;  %v1640_v51 = vld [vmem:[%s2286_s5 + $0x8] sm:$0xff] }
 0x551   :  { %585 = vmatpush.bf16.msrb.mxu1 %v1640_v51 }
 0x552   :  { %v515_v40 = vsel %vm39_vm0, %v511_v39, 0.0 }
 0x553   :  { %516 = vadd.xlane.f32.xlu2 %v515_v40 }
 0x555   :  { %586 = vmatpush.bf16.msrb.mxu1 %v1639_v54  ;;  %v612_v54 = vperm.slane %v1939_v53, 5 }
 0x5be   :  { %v514_v63 = vpop.xlane.xlu1 %513 }
 0x5bf   :  { %v518_v41 = vmul.f32 %v514_v63, %v1912_v10 }
 0x5c1   :  { %v520_v42 = vsub.f32 %v510_v35, %v518_v41 }
 0x5c3   :  { %v522_v43 = vmul.f32 %v520_v42, %v520_v42 }
 0x5c5   :  { %v524_v44 = vsel %vm39_vm0, %v522_v43, 0.0 }
 0x5c6   :  { %v517_v45 = vpop.xlane.xlu2 %516  ;;  %525 = vadd.xlane.f32.xlu0 %v524_v44 }
 0x5c7   :  { %v519_v50 = vmul.f32 %v517_v45, %v1912_v10 }
 0x5c9   :  { %v521_v46 = vsub.f32 %v511_v39, %v519_v50 }
 0x5cb   :  { %v523_v47 = vmul.f32 %v521_v46, %v521_v46 }
 0x5cd   :  { %v527_v48 = vsel %vm39_vm0, %v523_v47, 0.0 }
 0x5ce   :  { %528 = vadd.xlane.f32.xlu0 %v527_v48 }
 0x639   :  { %v526_v49 = vpop.xlane.xlu0 %525 }
 0x63a   :  { %v530_v52 = vmul.f32 %v526_v49, %v1912_v10 }
 0x63c   :  { %v532_v55 = vadd.f32 1e-05, %v530_v52 }
 0x63e   :  { %1750 = vrsqrt.f32 %v532_v55  ;;  %vm540_vm12 = vweird.f32 %v532_v55 }
 0x641   :  { %v529_v56 = vpop.xlane.xlu0 %528 }
 0x642   :  { %v531_v57 = vmul.f32 %v529_v56, %v1912_v10 }
 0x644   :  { %v1751_v58 = vpop.eup %1750  ;;  %v533_v59 = vadd.f32 1e-05, %v531_v57 }
 0x645   :  { %v535_v60 = vmul.f32 %v1751_v58, %v532_v55  ;;  %vm541_vm11 = vweird.f32 %v1751_v58 }
 0x646   :  { %1752 = vrsqrt.f32 %v533_v59  ;;  %vm542_vm13 = vmor %vm540_vm12, %vm541_vm11  ;;  %vm550_vm15 = vweird.f32 %v533_v59 }
 0x647   :  { %v536_v61 = vmul.f32 %v1751_v58, %v535_v60 }
 0x649   :  { %v537_v62 = vmul.f32 0.5, %v536_v61 }
 0x64b   :  { %v538_v0 = vsub.f32 1.5, %v537_v62 }
 0x64c   :  { %v1753_v1 = vpop.eup %1752 }
 0x64d   :  { %v539_v2 = vmul.f32 %v1751_v58, %v538_v0  ;;  %v545_v3 = vmul.f32 %v1753_v1, %v533_v59  ;;  %vm551_vm14 = vweird.f32 %v1753_v1 }
 0x64e   :  { %vm552_vm1 = vmor %vm550_vm15, %vm551_vm14 }
 0x64f   :  { %v546_v4 = vmul.f32 %v1753_v1, %v545_v3  ;;  %v543_v5 = vsel %vm542_vm13, %v1751_v58, %v539_v2 }
 0x650   :  { %v554_v9 = vmul.f32 %v543_v5, %v520_v42 }
 0x651   :  { %v547_v6 = vmul.f32 0.5, %v546_v4 }
 0x652   :  { %v557_v15 = vmul.f32 %v556_v8, %v554_v9 }
 0x653   :  { %v548_v7 = vsub.f32 1.5, %v547_v6 }
 0x654   :  { %v560_v19 = vadd.f32 %v559_v14, %v557_v15  ;;  %v1649_v15 = vld [vmem:[%s2284_s3 + $0x10] sm:$0xff] }
 0x655   :  { %v549_v11 = vmul.f32 %v1753_v1, %v548_v7 }
 0x657   :  { %v553_v12 = vsel %vm552_vm1, %v1753_v1, %v549_v11  ;;  %v1650_v11 = vld [vmem:[%s2284_s3 + $0x18] sm:$0xff] }
 0x658   :  { %v555_v16 = vmul.f32 %v553_v12, %v521_v46  ;;  %784 = vmatpush.bf16.msra.mxu2 %v1650_v11 }
 0x65a   :  { %v558_v17 = vmul.f32 %v556_v8, %v555_v16 }
 0x65c   :  { %v561_v20 = vadd.f32 %v559_v14, %v558_v17  ;;  %785 = vmatpush.bf16.msra.mxu2 %v1649_v15 }
 0x65e   :  { %v562_v21 = vpack.c.bf16 %v561_v20, %v560_v19 }
 0x660   :  { %1497 = vmatmul.msk.bf16.vlgmr.msrb.gmra.mxu1 %vm39_vm0, %v562_v21 }
 0x6dd   :  { %v588_v31 = vpop.f32.mrf.mxu1 }
 0x6de   :  { %v589_v32 = vadd.f32 %v588_v31, %v563_v29 }
 0x6e0   :  { %v593_v33 = vmul.f32 %v589_v32, %v589_v32 }
 0x6e2   :  { %v595_v34 = vmul.f32 %v593_v33, %v589_v32  ;;  %v721_v33 = vperm.slane %v1939_v53, 6 }
 0x6e4   :  { %v597_v35 = vmul.f32 0.044715, %v595_v34 }
 0x6e5   :  { %v590_v36 = vpop.f32.mrf.mxu1 }
 0x6e6   :  { %v599_v37 = vadd.f32 %v597_v35, %v589_v32  ;;  %v591_v38 = vadd.f32 %v590_v36, %v563_v29 }
 0x6e8   :  { %v601_v39 = vmul.f32 0.7978846, %v599_v37  ;;  %v594_v40 = vmul.f32 %v591_v38, %v591_v38  ;;  %v724_v37 = vperm.slane %v1939_v53, 7 }
 0x6ea   :  { %v596_v63 = vmul.f32 %v594_v40, %v591_v38  ;;  %1754 = vtanh.f32 %v601_v39 }
 0x6ec   :  { %v598_v41 = vmul.f32 0.044715, %v596_v63 }
 0x6ee   :  { %v600_v42 = vadd.f32 %v598_v41, %v591_v38 }
 0x6f0   :  { %v602_v43 = vmul.f32 0.7978846, %v600_v42  ;;  %v1755_v44 = vpop.eup %1754 }
 0x6f1   :  { %v605_v45 = vadd.f32 1.0, %v1755_v44 }
 0x6f2   :  { %1756 = vtanh.f32 %v602_v43  ;;  %v2117_v43 = vld [vmem:[%s2288_s7 + $0x8] sm:$0xff]  ;;  %s2292_s7 = smov 16  }
 0x6f3   :  { %v607_v46 = vmul.f32 0.5, %v605_v45  ;;  %v762_v53 = vperm.slane %v2117_v43, 0 }
 0x6f5   :  { %v609_v51 = vmul.f32 %v607_v46, %v589_v32 }
 0x6f8   :  { %v1757_v50 = vpop.eup %1756 }
 0x6f9   :  { %v606_v47 = vadd.f32 1.0, %v1757_v50 }
 0x6fb   :  { %v608_v48 = vmul.f32 0.5, %v606_v47 }
 0x6fd   :  { %v610_v49 = vmul.f32 %v608_v48, %v591_v38 }
 0x6ff   :  { %v611_v52 = vpack.c.bf16 %v610_v49, %v609_v51 }
 0x701   :  { %669 = vmatmul.bf16.vlgmr.msra.gmra.mxu3 %v611_v52 }
 0x784   :  { %v670_v55 = vpop.f32.mrf.mxu3 }
 0x785   :  { %v671_v56 = vadd.f32 %v670_v55, %v612_v54 }
 0x787   :  { %v675_v57 = vadd.f32 %v671_v56, %v560_v19 }
 0x789   :  { %v677_v58 = vsel %vm39_vm0, %v675_v57, 0.0 }
 0x78a   :  { %678 = vadd.xlane.f32.xlu0 %v677_v58 }
 0x78c   :  { %v672_v59 = vpop.f32.mrf.mxu3 }
 0x78d   :  { %v673_v60 = vadd.f32 %v672_v59, %v612_v54 }
 0x78f   :  { %v676_v61 = vadd.f32 %v673_v60, %v561_v20 }
 0x791   :  { %v680_v62 = vsel %vm39_vm0, %v676_v61, 0.0 }
 0x792   :  { %681 = vadd.xlane.f32.xlu0 %v680_v62 }
 0x7fd   :  { %v679_v0 = vpop.xlane.xlu0 %678 }
 0x7fe   :  { %v683_v1 = vmul.f32 %v679_v0, %v1912_v10 }
 0x800   :  { %v685_v2 = vsub.f32 %v675_v57, %v683_v1 }
 0x802   :  { %v687_v3 = vmul.f32 %v685_v2, %v685_v2 }
 0x804   :  { %v689_v4 = vsel %vm39_vm0, %v687_v3, 0.0 }
 0x805   :  { %690 = vadd.xlane.f32.xlu0 %v689_v4  ;;  %v682_v5 = vpop.xlane.xlu0 %681 }
 0x806   :  { %v684_v6 = vmul.f32 %v682_v5, %v1912_v10 }
 0x808   :  { %v686_v7 = vsub.f32 %v676_v61, %v684_v6 }
 0x80a   :  { %v688_v8 = vmul.f32 %v686_v7, %v686_v7 }
 0x80c   :  { %v692_v9 = vsel %vm39_vm0, %v688_v8, 0.0 }
 0x80d   :  { %693 = vadd.xlane.f32.xlu1 %v692_v9 }
 0x878   :  { %v691_v12 = vpop.xlane.xlu0 %690 }
 0x879   :  { %v695_v14 = vmul.f32 %v691_v12, %v1912_v10 }
 0x87b   :  { %v697_v16 = vadd.f32 1e-05, %v695_v14 }
 0x87d   :  { %1758 = vrsqrt.f32 %v697_v16  ;;  %vm705_vm3 = vweird.f32 %v697_v16 }
 0x880   :  { %v694_v17 = vpop.xlane.xlu1 %693 }
 0x881   :  { %v696_v19 = vmul.f32 %v694_v17, %v1912_v10 }
 0x883   :  { %v1759_v20 = vpop.eup %1758  ;;  %v698_v21 = vadd.f32 1e-05, %v696_v19 }
 0x884   :  { %v700_v22 = vmul.f32 %v1759_v20, %v697_v16  ;;  %vm706_vm2 = vweird.f32 %v1759_v20 }
 0x885   :  { %1760 = vrsqrt.f32 %v698_v21  ;;  %vm707_vm4 = vmor %vm705_vm3, %vm706_vm2  ;;  %vm715_vm6 = vweird.f32 %v698_v21 }
 0x886   :  { %v701_v23 = vmul.f32 %v1759_v20, %v700_v22 }
 0x888   :  { %v702_v24 = vmul.f32 0.5, %v701_v23 }
 0x88a   :  { %v703_v25 = vsub.f32 1.5, %v702_v24 }
 0x88b   :  { %v1761_v26 = vpop.eup %1760 }
 0x88c   :  { %v704_v27 = vmul.f32 %v1759_v20, %v703_v25  ;;  %v710_v28 = vmul.f32 %v1761_v26, %v698_v21  ;;  %vm716_vm5 = vweird.f32 %v1761_v26 }
 0x88d   :  { %vm717_vm7 = vmor %vm715_vm6, %vm716_vm5 }
 0x88e   :  { %v711_v29 = vmul.f32 %v1761_v26, %v710_v28  ;;  %v708_v30 = vsel %vm707_vm4, %v1759_v20, %v704_v27 }
 0x88f   :  { %v719_v34 = vmul.f32 %v708_v30, %v685_v2 }
 0x890   :  { %v712_v31 = vmul.f32 0.5, %v711_v29 }
 0x891   :  { %v722_v38 = vmul.f32 %v721_v33, %v719_v34 }
 0x892   :  { %v713_v32 = vsub.f32 1.5, %v712_v31 }
 0x893   :  { %v2107_v63 = vadd.f32 %v724_v37, %v722_v38 }
 0x894   :  { %v714_v35 = vmul.f32 %v1761_v26, %v713_v32 }
 0x896   :  { %v718_v36 = vsel %vm717_vm7, %v1761_v26, %v714_v35 }
 0x897   :  { %v720_v39 = vmul.f32 %v718_v36, %v686_v7 }
 0x899   :  { %v723_v40 = vmul.f32 %v721_v33, %v720_v39 }
 0x89b   :  { %v2109_v41 = vadd.f32 %v724_v37, %v723_v40 }
 0x89d   :  { %v761_v42 = vpack.c.bf16 %v2109_v41, %v2107_v63 }
 0x89f   :  { %1567 = vmatmul.msk.bf16.vlgmr.msra.gmra.mxu2 %vm39_vm0, %v761_v42 }
 0x922   :  { %v787_v44 = vpop.f32.mrf.mxu2 }
 0x923   :  { %v788_v45 = vadd.f32 %v787_v44, %v762_v53 }
 0x925   :  { %v792_v46 = vpack.c.bf16 %v788_v45, %v788_v45 }
 0x927   :  { %v796_v51 = vunpack.c.l.b16 %v792_v46 }
 0x92a   :  { %v789_v50 = vpop.f32.mrf.mxu2 }
 0x92b   :  { %v790_v47 = vadd.f32 %v789_v50, %v762_v53 }
 0x92d   :  { %v793_v48 = vpack.c.bf16 %v790_v47, %v790_v47 }
 0x92f   :  { %v797_v49 = vunpack.c.l.b16 %v793_v48 }
 0x931   :  { %v2120_v52 = vpack.c.b16 %v797_v49, %v796_v51 }
 0x933   :  { %799 = vrot.lane.b32.xlu2 %v2120_v52, %s1839_s21 }
 0x93b   :  { %868 = vrot.lane.b32.xlu2 %v2120_v52, %s1841_s23 }
 0x943   :  { %941 = vrot.lane.b32.xlu2 %v2120_v52, %s1843_s25  ;;  %s1853_s25 = smov 128  }
 0x94b   :  { %939 = vrot.lane.b32.xlu2 %v2120_v52, %s1844_s26 }
 0x98d   :  { %v800_v54 = vpop.permute.xlu2 %799 }
 0x98e   :  { %v805_v55 = vsel %vm166_vm8, %v800_v54, 0 }
 0x98f   :  { %814 = vmatpush.bf16.xpose.msrb.mxu0 %v805_v55 }
 0x995   :  { %v869_v12 = vpop.permute.xlu2 %868 }
 0x996   :  { %1568 = vmatmul.msk.bf16.vlgmr.msrb.gmra.mxu0 %vm166_vm8, %v2120_v52 }
 0x99d   :  { %v942_v16 = vpop.permute.xlu2 %941 }
 0x99e   :  { %v947_v19 = vsel %vm166_vm8, %v942_v16, 0 }
 0x9a5   :  { %v940_v33 = vpop.permute.xlu2 %939 }
 0xa13   :  { %v816_v56 = vpop.f32.mrf.mxu0 }
 0xa14   :  { %v821_v57 = vmul.f32 0.35355338, %v816_v56 }
 0xa16   :  { %v823_v58 = vadd.f32 %v821_v57, %v1970_v13 }
 0xa18   :  { %v825_v59 = vsel %vm191_vm9, %v823_v58, -inf }
 0xa19   :  { %826 = vmax.xlane.f32.xlu0 %v825_v59 }
 0xa1b   :  { %v818_v60 = vpop.f32.mrf.mxu0 }
 0xa1c   :  { %v822_v61 = vmul.f32 0.35355338, %v818_v60 }
 0xa1e   :  { %v824_v62 = vadd.f32 %v822_v61, %v1977_v18 }
 0xa20   :  { %v828_v0 = vsel %vm191_vm9, %v824_v62, -inf }
 0xa21   :  { %829 = vmax.xlane.f32.xlu1 %v828_v0 }
 0xa2d   :  { %870 = vrot.lane.b32.xlu0 %v2120_v52, %s1840_s22  ;;  %s1852_s22 = smov [#allocation2]  }
 0xa2e   :  { %s1449_s23 = sshll.u32 %s1852_s22, 4  ;;  %s1450_s23 = int_to_ptr.vmem [resolvable:$true] %s1449_s23 }
 0xa3a   :  { %848 = vrot.lane.b32.xlu1 %v2120_v52, %s1846_s10 }
 0xa8c   :  { %v827_v1 = vpop.xlane.xlu0 %826 }
 0xa8d   :  { %v831_v2 = vsub.f32 %v823_v58, %v827_v1 }
 0xa8f   :  { %v833_v3 = vmul.f32 1.442695, %v831_v2 }
 0xa91   :  { %1762 = vpow2.f32 %v833_v3 }
 0xa94   :  { %v830_v4 = vpop.xlane.xlu1 %829 }
 0xa95   :  { %v832_v5 = vsub.f32 %v824_v62, %v830_v4 }
 0xa97   :  { %v1763_v6 = vpop.eup %1762  ;;  %v835_v7 = vmul.f32 1.442695, %v832_v5 }
 0xa98   :  { %v837_v8 = vsel %vm191_vm9, %v1763_v6, 0.0 }
 0xa99   :  { %1764 = vpow2.f32 %v835_v7  ;;  %838 = vadd.xlane.f32.xlu0 %v837_v8 }
 0xa9f   :  { %v1765_v9 = vpop.eup %1764  ;;  %v871_v11 = vpop.permute.xlu0 %870 }
 0xaa0   :  { %v876_v14 = vsel %vm166_vm8, %v871_v11, 0  ;;  %v840_v15 = vsel %vm191_vm9, %v1765_v9, 0.0 }
 0xaa1   :  { %885 = vmatpush.bf16.xpose.msrb.mxu2 %v876_v14  ;;  %841 = vadd.xlane.f32.xlu1 %v840_v15 }
 0xaa8   :  { %1570 = vmatmul.msk.bf16.vlgmr.msrb.gmra.mxu2 %vm166_vm8, %v869_v12 }
 0xaac   :  { %v849_v17 = vpop.permute.xlu1 %848 }
 0xaad   :  { %1012 = vrot.lane.b32.xlu0 %v2120_v52, %s1838_s20  ;;  %861 = vmatpush.bf16.msra.mxu1 %v849_v17 }
 0xab1   :  { %956 = vmatpush.bf16.xpose.msrb.mxu1 %v947_v19 }
 0xaba   :  { %1010 = vrot.lane.b32.xlu1 %v2120_v52, %s1842_s24  ;;  %s1451_s24 = sshll.u32 %s2290_s9, 4  ;;  %s1452_s24 = int_to_ptr.hbm [resolvable:$true] %s1451_s24 }
 0xb0c   :  { %v839_v20 = vpop.xlane.xlu0 %838 }
 0xb0d   :  { %1766 = vrcp.f32 %v839_v20 }
 0xb13   :  { %v1767_v22 = vpop.eup %1766 }
 0xb14   :  { %v842_v21 = vpop.xlane.xlu1 %841  ;;  %v845_v24 = vmul.f32 %v1767_v22, %v1763_v6 }
 0xb15   :  { %1768 = vrcp.f32 %v842_v21 }
 0xb1b   :  { %v1769_v23 = vpop.eup %1768 }
 0xb1c   :  { %v846_v25 = vmul.f32 %v1769_v23, %v1765_v9 }
 0xb1e   :  { %v847_v26 = vpack.c.bf16 %v846_v25, %v845_v24 }
 0xb1f   :  { %v1013_v27 = vpop.permute.xlu0 %1012 }
 0xb20   :  { %v1018_v28 = vsel %vm166_vm8, %v1013_v27, 0  ;;  %1569 = vmatmul.msk.bf16.vlgmr.msra.gmra.mxu1 %vm191_vm9, %v847_v26 }
 0xb21   :  { %1027 = vmatpush.bf16.xpose.msra.mxu2 %v1018_v28 }
 0xb2b   :  { %v887_v29 = vpop.f32.mrf.mxu2 }
 0xb2c   :  { %v892_v30 = vmul.f32 0.35355338, %v887_v29  ;;  %v1011_v31 = vpop.permute.xlu1 %1010 }
 0xb2d   :  { %1574 = vmatmul.msk.bf16.vlgmr.msra.gmra.mxu2 %vm166_vm8, %v1011_v31 }
 0xb2e   :  { %v894_v32 = vadd.f32 %v892_v30, %v1970_v13 }
 0xb30   :  { %1572 = vmatmul.msk.bf16.vlgmr.msrb.gmra.mxu1 %vm166_vm8, %v940_v33  ;;  %v896_v34 = vsel %vm191_vm9, %v894_v32, -inf }
 0xb31   :  { %897 = vmax.xlane.f32.xlu0 %v896_v34 }
 0xb33   :  { %v889_v35 = vpop.f32.mrf.mxu2 }
 0xb34   :  { %v893_v36 = vmul.f32 0.35355338, %v889_v35 }
 0xb36   :  { %v895_v37 = vadd.f32 %v893_v36, %v1977_v18 }
 0xb38   :  { %v899_v38 = vsel %vm191_vm9, %v895_v37, -inf }
 0xb39   :  { %900 = vmax.xlane.f32.xlu2 %v899_v38 }
 0xb9d   :  { %v2158_v39 = vpop.f32.mrf.mxu1 }
 0xba4   :  { %v898_v45 = vpop.xlane.xlu0 %897 }
 0xba5   :  { %v2160_v40 = vpop.f32.mrf.mxu1  ;;  %v902_v51 = vsub.f32 %v894_v32, %v898_v45 }
 0xba7   :  { %v904_v56 = vmul.f32 1.442695, %v902_v51 }
 0xbac   :  { %v901_v42 = vpop.xlane.xlu2 %900 }
 0xbad   :  { %v903_v44 = vsub.f32 %v895_v37, %v901_v42  ;;  %v958_v53 = vpop.f32.mrf.mxu1 }
 0xbae   :  { %v963_v50 = vmul.f32 0.35355338, %v958_v53 }
 0xbaf   :  { %v906_v46 = vmul.f32 1.442695, %v903_v44 }
 0xbb0   :  { %v1029_v47 = vpop.f32.mrf.mxu2  ;;  %v965_v48 = vadd.f32 %v963_v50, %v1970_v13 }
 0xbb1   :  { %v1034_v49 = vmul.f32 0.35355338, %v1029_v47  ;;  %1770 = vpow2.f32 %v906_v46 }
 0xbb2   :  { %v967_v54 = vsel %vm191_vm9, %v965_v48, -inf  ;;  %1772 = vpow2.f32 %v904_v56 }
 0xbb3   :  { %968 = vmax.xlane.f32.xlu1 %v967_v54  ;;  %v1036_v55 = vadd.f32 %v1034_v49, %v1970_v13 }
 0xbb5   :  { %v960_v57 = vpop.f32.mrf.mxu1  ;;  %v1038_v58 = vsel %vm191_vm9, %v1036_v55, -inf }
 0xbb6   :  { %v964_v59 = vmul.f32 0.35355338, %v960_v57  ;;  %1039 = vmax.xlane.f32.xlu2 %v1038_v58 }
 0xbb7   :  { %v1771_v0 = vpop.eup %1770 }
 0xbb8   :  { %v1031_v60 = vpop.f32.mrf.mxu2  ;;  %v966_v61 = vadd.f32 %v964_v59, %v1977_v18  ;;  %v911_v3 = vsel %vm191_vm9, %v1771_v0, 0.0  ;;  %v1773_v4 = vpop.eup %1772 }
 0xbb9   :  { %v1035_v62 = vmul.f32 0.35355338, %v1031_v60  ;;  %v908_v5 = vsel %vm191_vm9, %v1773_v4, 0.0 }
 0xbba   :  { %v970_v1 = vsel %vm191_vm9, %v966_v61, -inf }
 0xbbb   :  { %971 = vmax.xlane.f32.xlu0 %v970_v1  ;;  %v1037_v2 = vadd.f32 %v1035_v62, %v1977_v18 }
 0xbbd   :  { %v1041_v13 = vsel %vm191_vm9, %v1037_v2, -inf }
 0xbbe   :  { %1042 = vmax.xlane.f32.xlu1 %v1041_v13  ;;  %912 = vadd.xlane.f32.xlu2 %v911_v3  ;;  %v1651_v13 = vld [vmem:[%s2285_s4 + $0x10] sm:$0xff] }
 0xbc3   :  { %909 = vadd.xlane.f32.xlu0 %v908_v5 }
 0xbd7   :  { %919 = vrot.lane.b32.xlu1 %v2120_v52, %s1845_s1 }
 0xc26   :  { %v969_v6 = vpop.xlane.xlu1 %968 }
 0xc27   :  { %v973_v9 = vsub.f32 %v965_v48, %v969_v6 }
 0xc29   :  { %v1040_v7 = vpop.xlane.xlu2 %1039  ;;  %v975_v18 = vmul.f32 1.442695, %v973_v9 }
 0xc2a   :  { %v1044_v8 = vsub.f32 %v1036_v55, %v1040_v7 }
 0xc2c   :  { %v1046_v11 = vmul.f32 1.442695, %v1044_v8 }
 0xc2e   :  { %1774 = vpow2.f32 %v1046_v11  ;;  %v972_v12 = vpop.xlane.xlu0 %971 }
 0xc2f   :  { %1776 = vpow2.f32 %v975_v18  ;;  %v974_v17 = vsub.f32 %v966_v61, %v972_v12 }
 0xc31   :  { %v1043_v14 = vpop.xlane.xlu1 %1042  ;;  %v977_v21 = vmul.f32 1.442695, %v974_v17  ;;  %v913_v25 = vpop.xlane.xlu2 %912 }
 0xc32   :  { %v1045_v15 = vsub.f32 %v1037_v2, %v1043_v14  ;;  %v1652_v2 = vld [vmem:[%s2285_s4 + $0x18] sm:$0xff] }
 0xc33   :  { %1134 = vmatpush.bf16.msra.mxu1 %v1652_v2 }
 0xc34   :  { %v1775_v16 = vpop.eup %1774  ;;  %v1048_v19 = vmul.f32 1.442695, %v1045_v15 }
 0xc35   :  { %v1050_v20 = vsel %vm191_vm9, %v1775_v16, 0.0  ;;  %v1777_v22 = vpop.eup %1776 }
 0xc36   :  { %1778 = vpow2.f32 %v1048_v19  ;;  %1051 = vadd.xlane.f32.xlu0 %v1050_v20  ;;  %v910_v23 = vpop.xlane.xlu0 %909  ;;  %v979_v27 = vsel %vm191_vm9, %v1777_v22, 0.0 }
 0xc37   :  { %1780 = vpow2.f32 %v977_v21  ;;  %1135 = vmatpush.bf16.msra.mxu1 %v1651_v13  ;;  %v1112_v21 = vperm.slane %v2117_v43, 1 }
 0xc38   :  { %1782 = vrcp.f32 %v910_v23 }
 0xc39   :  { %1784 = vrcp.f32 %v913_v25 }
 0xc3c   :  { %v1779_v24 = vpop.eup %1778 }
 0xc3d   :  { %v1053_v26 = vsel %vm191_vm9, %v1779_v24, 0.0  ;;  %v1781_v28 = vpop.eup %1780 }
 0xc3e   :  { %1054 = vadd.xlane.f32.xlu2 %v1053_v26  ;;  %980 = vadd.xlane.f32.xlu0 %v979_v27  ;;  %v1783_v29 = vpop.eup %1782  ;;  %v982_v30 = vsel %vm191_vm9, %v1781_v28, 0.0 }
 0xc3f   :  { %v1785_v31 = vpop.eup %1784  ;;  %v916_v32 = vmul.f32 %v1783_v29, %v1773_v4 }
 0xc40   :  { %v917_v33 = vmul.f32 %v1785_v31, %v1771_v0 }
 0xc42   :  { %v918_v35 = vpack.c.bf16 %v917_v33, %v916_v32 }
 0xc46   :  { %983 = vadd.xlane.f32.xlu2 %v982_v30 }
 0xc49   :  { %v920_v34 = vpop.permute.xlu1 %919 }
 0xc4a   :  { %932 = vmatpush.bf16.msra.mxu0 %v920_v34 }
 0xc4d   :  { %1571 = vmatmul.msk.bf16.vlgmr.msra.gmra.mxu0 %vm191_vm9, %v918_v35 }
 0xc52   :  { %990 = vrot.lane.b32.xlu0 %v2120_v52, %s1848_s12 }
 0xc5e   :  { %1061 = vrot.lane.b32.xlu2 %v2120_v52, %s1847_s11 }
 0xca9   :  { %v1052_v36 = vpop.xlane.xlu0 %1051 }
 0xcb1   :  { %v1055_v37 = vpop.xlane.xlu2 %1054  ;;  %v981_v38 = vpop.xlane.xlu0 %980 }
 0xcb2   :  { %1786 = vrcp.f32 %v1055_v37 }
 0xcb3   :  { %1788 = vrcp.f32 %v1052_v36 }
 0xcb8   :  { %v1787_v44 = vpop.eup %1786 }
 0xcb9   :  { %v984_v42 = vpop.xlane.xlu2 %983  ;;  %v1789_v53 = vpop.eup %1788  ;;  %v1059_v45 = vmul.f32 %v1787_v44, %v1779_v24  ;;  %v1653_v44 = vld [vmem:[%s2286_s5 + $0x10] sm:$0xff] }
 0xcba   :  { %1790 = vrcp.f32 %v984_v42  ;;  %v1058_v47 = vmul.f32 %v1789_v53, %v1775_v16 }
 0xcbb   :  { %1792 = vrcp.f32 %v981_v38 }
 0xcbc   :  { %v1060_v49 = vpack.c.bf16 %v1059_v45, %v1058_v47 }
 0xcc0   :  { %v1791_v50 = vpop.eup %1790 }
 0xcc1   :  { %v1793_v46 = vpop.eup %1792  ;;  %v1062_v48 = vpop.permute.xlu2 %1061  ;;  %v988_v51 = vmul.f32 %v1791_v50, %v1781_v28 }
 0xcc2   :  { %1074 = vmatpush.bf16.msrb.mxu0 %v1062_v48  ;;  %v987_v54 = vmul.f32 %v1793_v46, %v1777_v22 }
 0xcc4   :  { %v991_v52 = vpop.permute.xlu0 %990  ;;  %v989_v55 = vpack.c.bf16 %v988_v51, %v987_v54 }
 0xcc5   :  { %1003 = vmatpush.bf16.msrb.mxu3 %v991_v52  ;;  %1575 = vmatmul.msk.bf16.vlgmr.msrb.gmra.mxu0 %vm191_vm9, %v1060_v49 }
 0xcc8   :  { %1573 = vmatmul.msk.bf16.vlgmr.msrb.gmra.mxu3 %vm191_vm9, %v989_v55 }
 0xcca   :  { %v934_v56 = vpop.f32.mrf.mxu0 }
 0xcd2   :  { %v936_v57 = vpop.f32.mrf.mxu0 }
 0xcd3   :  { %v1697_v58 = vpack.i.bf16 %v936_v57, %v934_v56 }
 0xcd5   :  { %1698 = vrot.lane.b32.xlu1 %v1697_v58, %s1849_s0 }
 0xd42   :  { %v1076_v59 = vpop.f32.mrf.mxu0 }
 0xd47   :  { %v1699_v3 = vpop.permute.xlu1 %1698 }
 0xd48   :  { %v1701_v4 = vunpack.i.h.bf16 %v1699_v3  ;;  %v1700_v5 = vunpack.i.l.bf16 %v1699_v3 }
 0xd4a   :  { %v1078_v60 = vpop.f32.mrf.mxu0  ;;  %v1106_v11 = vsel %vm166_vm8, %v2160_v40, %v1701_v4  ;;  %v1105_v18 = vsel %vm166_vm8, %v2158_v39, %v1700_v5 }
 0xd4b   :  { %v1707_v61 = vpack.i.bf16 %v1078_v60, %v1076_v59  ;;  %v1005_v62 = vpop.f32.mrf.mxu3  ;;  %v1188_v60 = vperm.slane %v2117_v43, 2 }
 0xd4d   :  { %1708 = vrot.lane.b32.xlu0 %v1707_v61, %s1851_s14 }
 0xd53   :  { %v1007_v0 = vpop.f32.mrf.mxu3 }
 0xd54   :  { %v1702_v1 = vpack.i.bf16 %v1007_v0, %v1005_v62 }
 0xd56   :  { %1703 = vrot.lane.b32.xlu1 %v1702_v1, %s2292_s7  ;;  %v1191_v1 = vperm.slane %v2117_v43, 3 }
 0xdbf   :  { %v1709_v6 = vpop.permute.xlu0 %1708 }
 0xdc0   :  { %v1711_v12 = vunpack.i.h.bf16 %v1709_v6  ;;  %v1710_v14 = vunpack.i.l.bf16 %v1709_v6 }
 0xdc8   :  { %v1704_v7 = vpop.permute.xlu1 %1703 }
 0xdc9   :  { %v1706_v8 = vunpack.i.h.bf16 %v1704_v7  ;;  %v1705_v9 = vunpack.i.l.bf16 %v1704_v7  ;;  %v1662_v7 = vld [vmem:[%s2287_s6 + $0x78] sm:$0xff] }
 0xdca   :  { %1293 = vmatpush.bf16.msrb.mxu2 %v1662_v7 }
 0xdcb   :  { %v1108_v15 = vsel %vm191_vm9, %v1106_v11, %v1706_v8  ;;  %v1107_v16 = vsel %vm191_vm9, %v1105_v18, %v1705_v9  ;;  %v1661_v8 = vld [vmem:[%s2287_s6 + $0x70] sm:$0xff]  ;;  %v1660_v9 = vld [vmem:[%s2287_s6 + $0x68] sm:$0xff]  ;;  %v1659_v11 = vld [vmem:[%s2287_s6 + $0x60] sm:$0xff] }
 0xdcc   :  { %v1109_v17 = vsel %vm476_vm10, %v1107_v16, %v1710_v14  ;;  %v1110_v19 = vsel %vm476_vm10, %v1108_v15, %v1711_v12  ;;  %v1658_v18 = vld [vmem:[%s2287_s6 + $0x58] sm:$0xff]  ;;  %v1657_v12 = vld [vmem:[%s2287_s6 + $0x50] sm:$0xff]  ;;  %v1656_v14 = vld [vmem:[%s2287_s6 + $0x48] sm:$0xff]  ;;  %v1195_v15 = vperm.slane %v2117_v43, 4 }
 0xdcd   :  { %v1111_v20 = vpack.c.bf16 %v1110_v19, %v1109_v17  ;;  %v1655_v17 = vld [vmem:[%s2287_s6 + $0x40] sm:$0xff] }
 0xdce   :  { %1294 = vmatpush.bf16.msrb.mxu2 %v1661_v8 }
 0xdcf   :  { %1584 = vmatmul.msk.bf16.vlgmr.msra.gmra.mxu1 %vm39_vm0, %v1111_v20 }
 0xdd2   :  { %1295 = vmatpush.bf16.msrb.mxu2 %v1660_v9 }
 0xdd6   :  { %1296 = vmatpush.bf16.msrb.mxu2 %v1659_v11  ;;  %v1353_v11 = vperm.slane %v2117_v43, 6 }
 0xdda   :  { %1297 = vmatpush.bf16.msrb.mxu2 %v1658_v18 }
 0xdde   :  { %1298 = vmatpush.bf16.msrb.mxu2 %v1657_v12 }
 0xde2   :  { %1299 = vmatpush.bf16.msrb.mxu2 %v1656_v14 }
 0xde6   :  { %1300 = vmatpush.bf16.msrb.mxu2 %v1655_v17 }
 0xe4c   :  { %v1137_v22 = vpop.f32.mrf.mxu1 }
 0xe4d   :  { %v1138_v40 = vadd.f32 %v1137_v22, %v1112_v21 }
 0xe4f   :  { %v1142_v23 = vadd.f32 %v1138_v40, %v2107_v63 }
 0xe51   :  { %v1144_v39 = vsel %vm39_vm0, %v1142_v23, 0.0 }
 0xe52   :  { %1145 = vadd.xlane.f32.xlu1 %v1144_v39 }
 0xe54   :  { %v1139_v24 = vpop.f32.mrf.mxu1 }
 0xe55   :  { %v1140_v25 = vadd.f32 %v1139_v24, %v1112_v21 }
 0xe57   :  { %v1143_v26 = vadd.f32 %v1140_v25, %v2109_v41  ;;  %v1654_v41 = vld [vmem:[%s2286_s5 + $0x18] sm:$0xff] }
 0xe58   :  { %1217 = vmatpush.bf16.msra.mxu3 %v1654_v41 }
 0xe59   :  { %v1147_v27 = vsel %vm39_vm0, %v1143_v26, 0.0 }
 0xe5a   :  { %1148 = vadd.xlane.f32.xlu2 %v1147_v27 }
 0xe5c   :  { %1218 = vmatpush.bf16.msra.mxu3 %v1653_v44 }
 0xec5   :  { %v1146_v28 = vpop.xlane.xlu1 %1145 }
 0xec6   :  { %v1150_v29 = vmul.f32 %v1146_v28, %v1912_v10 }
 0xec8   :  { %v1152_v30 = vsub.f32 %v1142_v23, %v1150_v29 }
 0xeca   :  { %v1154_v31 = vmul.f32 %v1152_v30, %v1152_v30 }
 0xecc   :  { %v1156_v32 = vsel %vm39_vm0, %v1154_v31, 0.0 }
 0xecd   :  { %v1149_v33 = vpop.xlane.xlu2 %1148  ;;  %1157 = vadd.xlane.f32.xlu0 %v1156_v32 }
 0xece   :  { %v1151_v63 = vmul.f32 %v1149_v33, %v1912_v10 }
 0xed0   :  { %v1153_v34 = vsub.f32 %v1143_v26, %v1151_v63 }
 0xed2   :  { %v1155_v35 = vmul.f32 %v1153_v34, %v1153_v34 }
 0xed4   :  { %v1159_v36 = vsel %vm39_vm0, %v1155_v35, 0.0 }
 0xed5   :  { %1160 = vadd.xlane.f32.xlu1 %v1159_v36 }
 0xf40   :  { %v1158_v37 = vpop.xlane.xlu0 %1157 }
 0xf41   :  { %v1162_v38 = vmul.f32 %v1158_v37, %v1912_v10  ;;  %v1244_v37 = vperm.slane %v2117_v43, 5 }
 0xf43   :  { %v1164_v42 = vadd.f32 1e-05, %v1162_v38 }
 0xf45   :  { %1794 = vrsqrt.f32 %v1164_v42  ;;  %vm1172_vm9 = vweird.f32 %v1164_v42 }
 0xf48   :  { %v1161_v53 = vpop.xlane.xlu1 %1160 }
 0xf49   :  { %v1163_v45 = vmul.f32 %v1161_v53, %v1912_v10 }
 0xf4b   :  { %v1795_v50 = vpop.eup %1794  ;;  %v1165_v46 = vadd.f32 1e-05, %v1163_v45 }
 0xf4c   :  { %v1167_v47 = vmul.f32 %v1795_v50, %v1164_v42  ;;  %vm1173_vm8 = vweird.f32 %v1795_v50 }
 0xf4d   :  { %1796 = vrsqrt.f32 %v1165_v46  ;;  %vm1174_vm10 = vmor %vm1172_vm9, %vm1173_vm8  ;;  %vm1182_vm12 = vweird.f32 %v1165_v46 }
 0xf4e   :  { %v1168_v48 = vmul.f32 %v1795_v50, %v1167_v47 }
 0xf50   :  { %v1169_v51 = vmul.f32 0.5, %v1168_v48 }
 0xf52   :  { %v1170_v49 = vsub.f32 1.5, %v1169_v51 }
 0xf53   :  { %v1797_v54 = vpop.eup %1796 }
 0xf54   :  { %v1171_v52 = vmul.f32 %v1795_v50, %v1170_v49  ;;  %v1177_v55 = vmul.f32 %v1797_v54, %v1165_v46  ;;  %vm1183_vm11 = vweird.f32 %v1797_v54 }
 0xf55   :  { %vm1184_vm13 = vmor %vm1182_vm12, %vm1183_vm11 }
 0xf56   :  { %v1178_v56 = vmul.f32 %v1797_v54, %v1177_v55  ;;  %v1175_v57 = vsel %vm1174_vm10, %v1795_v50, %v1171_v52 }
 0xf57   :  { %v1186_v61 = vmul.f32 %v1175_v57, %v1152_v30 }
 0xf58   :  { %v1179_v58 = vmul.f32 0.5, %v1178_v56 }
 0xf59   :  { %v1189_v2 = vmul.f32 %v1188_v60, %v1186_v61 }
 0xf5a   :  { %v1180_v59 = vsub.f32 1.5, %v1179_v58 }
 0xf5b   :  { %v1192_v4 = vadd.f32 %v1191_v1, %v1189_v2 }
 0xf5c   :  { %v1181_v62 = vmul.f32 %v1797_v54, %v1180_v59 }
 0xf5e   :  { %v1185_v0 = vsel %vm1184_vm13, %v1797_v54, %v1181_v62 }
 0xf5f   :  { %v1187_v13 = vmul.f32 %v1185_v0, %v1153_v34 }
 0xf61   :  { %v1190_v3 = vmul.f32 %v1188_v60, %v1187_v13 }
 0xf63   :  { %v1193_v5 = vadd.f32 %v1191_v1, %v1190_v3 }
 0xf65   :  { %v1194_v6 = vpack.c.bf16 %v1193_v5, %v1192_v4 }
 0xf67   :  { %1593 = vmatmul.msk.bf16.vlgmr.msra.gmra.mxu3 %vm39_vm0, %v1194_v6 }
 0xfea   :  { %v1220_v16 = vpop.f32.mrf.mxu3 }
 0xfeb   :  { %v1221_v19 = vadd.f32 %v1220_v16, %v1195_v15 }
 0xfed   :  { %v1225_v20 = vmul.f32 %v1221_v19, %v1221_v19 }
 0xfef   :  { %v1227_v21 = vmul.f32 %v1225_v20, %v1221_v19 }
 0xff1   :  { %v1229_v22 = vmul.f32 0.044715, %v1227_v21 }
 0xff2   :  { %v1222_v40 = vpop.f32.mrf.mxu3 }
 0xff3   :  { %v1231_v23 = vadd.f32 %v1229_v22, %v1221_v19  ;;  %v1223_v39 = vadd.f32 %v1222_v40, %v1195_v15  ;;  %v1356_v15 = vperm.slane %v2117_v43, 7 }
 0xff5   :  { %v1233_v24 = vmul.f32 0.7978846, %v1231_v23  ;;  %v1226_v25 = vmul.f32 %v1223_v39, %v1223_v39 }
 0xff7   :  { %v1228_v26 = vmul.f32 %v1226_v25, %v1223_v39  ;;  %1798 = vtanh.f32 %v1233_v24 }
 0xff9   :  { %v1230_v27 = vmul.f32 0.044715, %v1228_v26 }
 0xffb   :  { %v1232_v28 = vadd.f32 %v1230_v27, %v1223_v39 }
 0xffd   :  { %v1234_v29 = vmul.f32 0.7978846, %v1232_v28  ;;  %v1799_v30 = vpop.eup %1798 }
 0xffe   :  { %v1237_v31 = vadd.f32 1.0, %v1799_v30 }
 0xfff   :  { %1800 = vtanh.f32 %v1234_v29 }
0x1000   :  { %v1239_v33 = vmul.f32 0.5, %v1237_v31 }
0x1002   :  { %v1241_v35 = vmul.f32 %v1239_v33, %v1221_v19 }
0x1005   :  { %v1801_v32 = vpop.eup %1800 }
0x1006   :  { %v1238_v63 = vadd.f32 1.0, %v1801_v32 }
0x1008   :  { %v1240_v34 = vmul.f32 0.5, %v1238_v63 }
0x100a   :  { %v1242_v36 = vmul.f32 %v1240_v34, %v1223_v39  ;;  %v1664_v34 = vld [vmem:[%s2289_s8 + $0x8] sm:$0xff] }
0x100b   :  { %1435 = vmatpush.bf16.msra.mxu0 %v1664_v34 }
0x100c   :  { %v1243_v41 = vpack.c.bf16 %v1242_v36, %v1241_v35 }
0x100e   :  { %1301 = vmatmul.bf16.vlgmr.msrb.gmra.mxu2 %v1243_v41 }
0x1091   :  { %v1302_v38 = vpop.f32.mrf.mxu2 }
0x1092   :  { %v1303_v42 = vadd.f32 %v1302_v38, %v1244_v37 }
0x1094   :  { %v1307_v44 = vadd.f32 %v1303_v42, %v1192_v4 }
0x1096   :  { %v1309_v53 = vsel %vm39_vm0, %v1307_v44, 0.0 }
0x1097   :  { %1310 = vadd.xlane.f32.xlu2 %v1309_v53 }
0x1099   :  { %v1304_v45 = vpop.f32.mrf.mxu2 }
0x109a   :  { %v1305_v50 = vadd.f32 %v1304_v45, %v1244_v37  ;;  %v1663_v37 = vld [vmem:[%s2289_s8] sm:$0xff] }
0x109b   :  { %1436 = vmatpush.bf16.msra.mxu0 %v1663_v37 }
0x109c   :  { %v1308_v46 = vadd.f32 %v1305_v50, %v1193_v5 }
0x109e   :  { %v1312_v47 = vsel %vm39_vm0, %v1308_v46, 0.0 }
0x109f   :  { %1313 = vadd.xlane.f32.xlu0 %v1312_v47 }
0x110a   :  { %v1311_v48 = vpop.xlane.xlu2 %1310 }
0x110b   :  { %v1315_v51 = vmul.f32 %v1311_v48, %v1912_v10 }
0x110d   :  { %v1317_v49 = vsub.f32 %v1307_v44, %v1315_v51 }
0x110f   :  { %v1319_v54 = vmul.f32 %v1317_v49, %v1317_v49 }
0x1111   :  { %v1321_v52 = vsel %vm39_vm0, %v1319_v54, 0.0 }
0x1112   :  { %v1314_v55 = vpop.xlane.xlu0 %1313  ;;  %1322 = vadd.xlane.f32.xlu1 %v1321_v52 }
0x1113   :  { %v1316_v56 = vmul.f32 %v1314_v55, %v1912_v10 }
0x1115   :  { %v1318_v57 = vsub.f32 %v1308_v46, %v1316_v56 }
0x1117   :  { %v1320_v58 = vmul.f32 %v1318_v57, %v1318_v57 }
0x1119   :  { %v1324_v59 = vsel %vm39_vm0, %v1320_v58, 0.0 }
0x111a   :  { %1325 = vadd.xlane.f32.xlu2 %v1324_v59 }
0x1185   :  { %v1323_v60 = vpop.xlane.xlu1 %1322 }
0x1186   :  { %v1327_v61 = vmul.f32 %v1323_v60, %v1912_v10 }
0x1188   :  { %v1329_v62 = vadd.f32 1e-05, %v1327_v61 }
0x118a   :  { %1802 = vrsqrt.f32 %v1329_v62  ;;  %vm1337_vm15 = vweird.f32 %v1329_v62 }
0x118d   :  { %v1326_v0 = vpop.xlane.xlu2 %1325 }
0x118e   :  { %v1328_v1 = vmul.f32 %v1326_v0, %v1912_v10 }
0x1190   :  { %v1803_v2 = vpop.eup %1802  ;;  %v1330_v13 = vadd.f32 1e-05, %v1328_v1 }
0x1191   :  { %v1332_v3 = vmul.f32 %v1803_v2, %v1329_v62  ;;  %vm1338_vm14 = vweird.f32 %v1803_v2 }
0x1192   :  { %1804 = vrsqrt.f32 %v1330_v13  ;;  %vm1339_vm1 = vmor %vm1337_vm15, %vm1338_vm14  ;;  %vm1347_vm3 = vweird.f32 %v1330_v13 }
0x1193   :  { %v1333_v4 = vmul.f32 %v1803_v2, %v1332_v3 }
0x1195   :  { %v1334_v5 = vmul.f32 0.5, %v1333_v4 }
0x1197   :  { %v1335_v6 = vsub.f32 1.5, %v1334_v5 }
0x1198   :  { %v1805_v7 = vpop.eup %1804 }
0x1199   :  { %v1336_v8 = vmul.f32 %v1803_v2, %v1335_v6  ;;  %v1342_v9 = vmul.f32 %v1805_v7, %v1330_v13  ;;  %vm1348_vm2 = vweird.f32 %v1805_v7 }
0x119a   :  { %vm1349_vm4 = vmor %vm1347_vm3, %vm1348_vm2 }
0x119b   :  { %v1343_v18 = vmul.f32 %v1805_v7, %v1342_v9  ;;  %v1340_v12 = vsel %vm1339_vm1, %v1803_v2, %v1336_v8 }
0x119c   :  { %v1351_v14 = vmul.f32 %v1340_v12, %v1317_v49 }
0x119d   :  { %v1344_v16 = vmul.f32 0.5, %v1343_v18 }
0x119e   :  { %v1354_v17 = vmul.f32 %v1353_v11, %v1351_v14 }
0x119f   :  { %v1345_v19 = vsub.f32 1.5, %v1344_v16 }
0x11a0   :  { %v1357_v20 = vadd.f32 %v1356_v15, %v1354_v17 }
0x11a1   :  { %v1346_v21 = vmul.f32 %v1805_v7, %v1345_v19 }
0x11a2   :  { %v1359_v22 = vsel %vm39_vm0, %v1357_v20, 0.0 }
0x11a3   :  { %1360 = vadd.xlane.f32.xlu0 %v1359_v22  ;;  %v1350_v40 = vsel %vm1349_vm4, %v1805_v7, %v1346_v21 }
0x11a4   :  { %v1352_v23 = vmul.f32 %v1350_v40, %v1318_v57 }
0x11a6   :  { %v1355_v39 = vmul.f32 %v1353_v11, %v1352_v23 }
0x11a8   :  { %v1358_v24 = vadd.f32 %v1356_v15, %v1355_v39 }
0x11aa   :  { %v1362_v25 = vsel %vm39_vm0, %v1358_v24, 0.0 }
0x11ab   :  { %1363 = vadd.xlane.f32.xlu1 %v1362_v25 }
0x1216   :  { %v1361_v26 = vpop.xlane.xlu0 %1360 }
0x1217   :  { %v1365_v43 = vmul.f32 %v1361_v26, %v1912_v10 }
0x1219   :  { %v1367_v27 = vsub.f32 %v1357_v20, %v1365_v43 }
0x121b   :  { %v1369_v28 = vmul.f32 %v1367_v27, %v1367_v27 }
0x121d   :  { %v1371_v29 = vsel %vm39_vm0, %v1369_v28, 0.0 }
0x121e   :  { %1372 = vadd.xlane.f32.xlu2 %v1371_v29  ;;  %v1364_v30 = vpop.xlane.xlu1 %1363 }
0x121f   :  { %v1366_v31 = vmul.f32 %v1364_v30, %v1912_v10 }
0x1221   :  { %v1368_v32 = vsub.f32 %v1358_v24, %v1366_v31 }
0x1223   :  { %v1370_v33 = vmul.f32 %v1368_v32, %v1368_v32 }
0x1225   :  { %v1374_v63 = vsel %vm39_vm0, %v1370_v33, 0.0 }
0x1226   :  { %1375 = vadd.xlane.f32.xlu0 %v1374_v63 }
0x1291   :  { %v1373_v35 = vpop.xlane.xlu2 %1372 }
0x1292   :  { %v1377_v36 = vmul.f32 %v1373_v35, %v1912_v10 }
0x1294   :  { %v1379_v41 = vadd.f32 1e-05, %v1377_v36 }
0x1296   :  { %1806 = vrsqrt.f32 %v1379_v41  ;;  %vm1387_vm6 = vweird.f32 %v1379_v41 }
0x1299   :  { %v1376_v38 = vpop.xlane.xlu0 %1375 }
0x129a   :  { %v1378_v42 = vmul.f32 %v1376_v38, %v1912_v10  ;;  %v1810_v10 = vld [vmem:[%s2283_s2] sm:$0xf] }
0x129b   :  { %v1403_v57 = vperm.slane %v1810_v10, 2  ;;  %v1406_v61 = vperm.slane %v1810_v10, 3 }
0x129c   :  { %v1807_v44 = vpop.eup %1806  ;;  %v1380_v53 = vadd.f32 1e-05, %v1378_v42 }
0x129d   :  { %v1382_v45 = vmul.f32 %v1807_v44, %v1379_v41  ;;  %vm1388_vm5 = vweird.f32 %v1807_v44 }
0x129e   :  { %1808 = vrsqrt.f32 %v1380_v53  ;;  %vm1389_vm7 = vmor %vm1387_vm6, %vm1388_vm5  ;;  %vm1397_vm9 = vweird.f32 %v1380_v53 }
0x129f   :  { %v1383_v50 = vmul.f32 %v1807_v44, %v1382_v45 }
0x12a1   :  { %v1384_v46 = vmul.f32 0.5, %v1383_v50 }
0x12a3   :  { %v1385_v47 = vsub.f32 1.5, %v1384_v46 }
0x12a4   :  { %v1809_v48 = vpop.eup %1808 }
0x12a5   :  { %v1386_v51 = vmul.f32 %v1807_v44, %v1385_v47  ;;  %v1392_v49 = vmul.f32 %v1809_v48, %v1380_v53  ;;  %vm1398_vm8 = vweird.f32 %v1809_v48 }
0x12a6   :  { %vm1399_vm10 = vmor %vm1397_vm9, %vm1398_vm8 }
0x12a7   :  { %v1393_v54 = vmul.f32 %v1809_v48, %v1392_v49  ;;  %v1390_v52 = vsel %vm1389_vm7, %v1807_v44, %v1386_v51 }
0x12a8   :  { %v1401_v58 = vmul.f32 %v1390_v52, %v1367_v27 }
0x12a9   :  { %v1394_v55 = vmul.f32 0.5, %v1393_v54 }
0x12aa   :  { %v1404_v62 = vmul.f32 %v1403_v57, %v1401_v58 }
0x12ab   :  { %v1395_v56 = vsub.f32 1.5, %v1394_v55 }
0x12ac   :  { %v1407_v2 = vadd.f32 %v1406_v61, %v1404_v62 }
0x12ad   :  { %v1396_v59 = vmul.f32 %v1809_v48, %v1395_v56 }
0x12af   :  { %v1400_v60 = vsel %vm1399_vm10, %v1809_v48, %v1396_v59 }
0x12b0   :  { %v1402_v0 = vmul.f32 %v1400_v60, %v1368_v32 }
0x12b2   :  { %v1405_v1 = vmul.f32 %v1403_v57, %v1402_v0 }
0x12b4   :  { %v1408_v13 = vadd.f32 %v1406_v61, %v1405_v1 }
0x12b6   :  { %v1409_v3 = vpack.c.bf16 %v1408_v13, %v1407_v2 }
0x12b8   :  { %1634 = vmatmul.msk.bf16.vlgmr.msra.gmra.mxu0 %vm39_vm0, %v1409_v3 }
0x1335   :  { %v1438_v4 = vpop.f32.mrf.mxu0 }
0x1336   :  { %1443 = vst [vmem:[#allocation2] sm:$0xff] %v1438_v4 }
0x133d   :  { %v1440_v5 = vpop.f32.mrf.mxu0 }
0x133e   :  { %1444 = vst [vmem:[#allocation2 + $0x8] sm:$0xff] %v1440_v5 }
0x133f   :  { %1457 = dma.vmem_to_hbm [thread:$0]  %s1450_s23, 256, %s1452_s24, [#allocation3], %s1853_s25, %s1853_s25, %s1849_s0  }
0x1340   :  { %1835 = dma.done.wait [#allocation3], 256  }
0x1341   :  { %1836 = vsyncadd [#allocation3], 4294967040 }
0x1342   :  { %1462 = vsyncpa [#allocation3], 1 }

</bundles_post_ra>
